<compile_context>
chip_gen: v7x
topology: tpu7x:2x2x1
jax: 0.10.0
libtpu: 0.0.40
codegen_flags: <defaults>
</compile_context>

<pallas_src>
import functools

import jax
import jax.numpy as jnp
from jax import lax
from jax.experimental import pallas as pl
from jax.experimental.pallas import tpu as pltpu

_BN_EPS = 1e-5


def _im2col_3x3(v, pad_ref):
    """Build the (M, 9*C) im2col slab for a 3x3 / pad-1 conv of v = (N, H, W, C).

    The padded scratch interior is written once; only the 4 halo strips are
    zeroed (no full-tensor zero fill).  The 9 shifted windows are read back and
    concatenated on the lane (channel) axis, column order = (kh*3 + kw)*C + c.
    """
    n, h, w, c = v.shape
    pad_ref[:, 1:h + 1, 1:w + 1, :] = v
    zrow = jnp.zeros((n, 1, w + 2, c), jnp.float32)
    pad_ref[:, 0:1, :, :] = zrow
    pad_ref[:, h + 1:h + 2, :, :] = zrow
    zcol = jnp.zeros((n, h, 1, c), jnp.float32)
    pad_ref[:, 1:h + 1, 0:1, :] = zcol
    pad_ref[:, 1:h + 1, w + 1:w + 2, :] = zcol

    m = n * h * w
    taps = [pad_ref[:, kh:kh + h, kw:kw + w, :].reshape(m, c)
            for kh in range(3) for kw in range(3)]
    return jnp.concatenate(taps, axis=-1)  # (M, 9*C)


def depth_down_kernel(x_ref,
                      w1_ref, b1_ref, g1_ref, beta1_ref,
                      w2t_ref, b2_ref, g2_ref, beta2_ref,
                      out_ref, pad1_ref, pad2_ref):
    n, h, wp, twoc = x_ref.shape      # input pre-reshaped to (N, H, W/2, 2*Cin)
    cin = twoc // 2
    h2 = h // 2
    cout = w1_ref.shape[-1]
    m = n * h2 * wp

    # ---- MaxPool2d(2).  The horizontal pixel pair already sits on the lane
    # axis (free wrapper reshape), so it is a plain lane-slice max; the
    # vertical pair is a stride-2 read on the major (non-sublane) H axis only.
    top = x_ref[:, pl.ds(0, h2, 2), :, :]
    bot = x_ref[:, pl.ds(1, h2, 2), :, :]
    hmax = jnp.maximum(top, bot)                                    # (N,H2,W2,2C)
    pooled = jnp.maximum(hmax[..., :cin], hmax[..., cin:]).astype(jnp.float32)

    # ---- block 1: fused depthwise+pointwise as one (M,9Cin)@(9Cin,Cout) matmul.
    # NOTE: on v6e/v7x the slab/weights could be cast to bf16
    # (preferred_element_type=f32) for more MXU throughput; kept f32 here since
    # K is tiny and it preserves exact numerics.
    slab1 = _im2col_3x3(pooled, pad1_ref)
    y1 = jnp.dot(slab1, w1_ref[...],
                 preferred_element_type=jnp.float32) + b1_ref[...]  # (M, Cout)

    # BatchNorm (training-mode batch stats) folded into one FMA: y*s + t.
    # NOTE: at realistic M these axis-0 sums should become a ones-row MXU
    # matmul; negligible at M=128 (reviewer's own caveat).
    inv_m = 1.0 / m
    mean1 = jnp.sum(y1, axis=0, keepdims=True) * inv_m              # (1, Cout)
    d1 = y1 - mean1
    var1 = jnp.sum(d1 * d1, axis=0, keepdims=True) * inv_m
    s1 = g1_ref[...] * lax.rsqrt(var1 + _BN_EPS)
    t1 = beta1_ref[...] - mean1 * s1
    y1 = jnp.maximum(y1 * s1 + t1, 0.0)                             # (M, Cout)

    # ---- block 2: same fusion, computed Cout-major (N/T matmul, q@k.T style)
    # so the final store is a fully lane-dense (Cout, M) slab and the BN/ReLU
    # epilogue runs at full 128-lane occupancy with lane-direction reductions.
    slab2 = _im2col_3x3(y1.reshape(n, h2, wp, cout), pad2_ref)      # (M, 9*Cout)
    y2 = lax.dot_general(
        w2t_ref[...], slab2,
        dimension_numbers=(((1,), (1,)), ((), ())),
        preferred_element_type=jnp.float32) + b2_ref[...]           # (Cout, M)
    mean2 = jnp.mean(y2, axis=1, keepdims=True)                     # (Cout, 1)
    d2 = y2 - mean2
    var2 = jnp.mean(d2 * d2, axis=1, keepdims=True)
    s2 = g2_ref[...] * lax.rsqrt(var2 + _BN_EPS)
    t2 = beta2_ref[...] - mean2 * s2
    out_ref[...] = jnp.maximum(y2 * s2 + t2, 0.0).astype(out_ref.dtype)


def _fuse_dpw(dw_w, dw_b, pw_w, pw_b):
    """Fold depthwise-3x3 + pointwise-1x1 into one (9*Cin, Cout) weight + bias."""
    cout = pw_w.shape[-1]
    w = (dw_w[:, :, None] * pw_w[None, :, :]).reshape(-1, cout)  # row = k*Cin + c
    b = dw_b @ pw_w + pw_b                                       # (1, Cout)
    return w, b


def depth_down_pallas(x_nchw, params):
    n, cin, h, w = x_nchw.shape
    assert h % 2 == 0 and w % 2 == 0, "even H/W required"
    # TODO(synk): odd H/W (PyTorch MaxPool2d floor behavior) not handled.
    cout = params["pw1_w"].shape[-1]
    h2, w2 = h // 2, w // 2
    m = n * h2 * w2

    # One-time host-side weight fusion (outside the kernel).
    w1_f, b1_f = _fuse_dpw(params["dw1_w"], params["dw1_b"],
                           params["pw1_w"], params["pw1_b"])
    w2_f, b2_f = _fuse_dpw(params["dw2_w"], params["dw2_b"],
                           params["pw2_w"], params["pw2_b"])
    # Layer-2 operands in Cout-major orientation (lane-dense output path).
    w2_t = w2_f.T                       # (Cout, 9*Cout)
    b2_col = b2_f.T                     # (Cout, 1)
    g2_col = params["bn2_g"].T          # (Cout, 1)
    beta2_col = params["bn2_b"].T       # (Cout, 1)

    # NCHW -> NHWC, then a FREE reshape that puts the horizontal pooling pair
    # on the lane axis: (N, H, W, C) -> (N, H, W/2, 2*C).
    # TODO(synk): at scale, fold this transpose into the kernel / BlockSpec
    # index_map (grid over C) to avoid the extra HBM round trip.
    x = jnp.transpose(x_nchw, (0, 2, 3, 1)).reshape(n, h, w2, 2 * cin)

    args = (x,
            w1_f, b1_f, params["bn1_g"], params["bn1_b"],
            w2_t, b2_col, g2_col, beta2_col)

    vmem = functools.partial(pl.BlockSpec, memory_space=pltpu.MemorySpace.VMEM)

    flops = (2 * m * 9 * cin * cout          # fused matmul 1
             + 2 * m * 9 * cout * cout       # fused matmul 2
             + 16 * m * cout)                # pool / BN / ReLU elementwise
    cost = pl.CostEstimate(
        flops=flops,
        transcendentals=2 * cout,
        bytes_accessed=int(x.size * 4 + m * cout * 4
                           + (w1_f.size + w2_t.size) * 4))

    out_cm = pl.pallas_call(
        depth_down_kernel,
        out_shape=jax.ShapeDtypeStruct((cout, m), x.dtype),   # lane-dense slab
        in_specs=[vmem() for _ in args],
        out_specs=vmem(),
        scratch_shapes=[
            pltpu.VMEM((n, h2 + 2, w2 + 2, cin), jnp.float32),
            pltpu.VMEM((n, h2 + 2, w2 + 2, cout), jnp.float32),
        ],
        compiler_params=pltpu.CompilerParams(
            vmem_limit_bytes=32 * 1024 * 1024),
        cost_estimate=cost,
    )(*args)
    # TODO(synk): at realistic sizes, add a spatial/batch grid with a two-pass
    # BN (sum/sumsq accumulation across an "arbitrary" axis) and mark the
    # independent axis "parallel" for v7x megacore; single-pass BN batch stats
    # forbid naive spatial tiling, so the gridless form is kept at toy size.

    # (Cout, N*H2*W2) -> NCHW.
    return jnp.transpose(out_cm.reshape(cout, n, h2, w2), (1, 0, 2, 3))


def init_params(key, in_ch, out_ch):
    """Deterministic synthetic parameters matching the module's shapes."""
    ks = jax.random.split(key, 8)

    def nrm(k, shape, scale):
        return scale * jax.random.normal(k, shape, jnp.float32)

    return dict(
        # DeepWise_PointWise_Conv(in_ch, out_ch)
        dw1_w=nrm(ks[0], (9, in_ch), 0.3),        # depthwise (in,1,3,3) -> (kh*3+kw, c)
        dw1_b=nrm(ks[1], (1, in_ch), 0.1),
        pw1_w=nrm(ks[2], (in_ch, out_ch), 0.3),   # pointwise (out,in,1,1) -> (in, out)
        pw1_b=nrm(ks[3], (1, out_ch), 0.1),
        # BatchNorm2d(out_ch) default init
        bn1_g=jnp.ones((1, out_ch), jnp.float32),
        bn1_b=jnp.zeros((1, out_ch), jnp.float32),
        # DeepWise_PointWise_Conv(out_ch, out_ch)
        dw2_w=nrm(ks[4], (9, out_ch), 0.3),
        dw2_b=nrm(ks[5], (1, out_ch), 0.1),
        pw2_w=nrm(ks[6], (out_ch, out_ch), 0.3),
        pw2_b=nrm(ks[7], (1, out_ch), 0.1),
        bn2_g=jnp.ones((1, out_ch), jnp.float32),
        bn2_b=jnp.zeros((1, out_ch), jnp.float32),
    )


def depth_down_ref(x_nchw, params):
    """Pure-JAX reference mirroring the PyTorch forward (training-mode BN)."""
    x = jnp.transpose(x_nchw, (0, 2, 3, 1))
    x = lax.reduce_window(x, -jnp.inf, lax.max, (1, 2, 2, 1), (1, 2, 2, 1), "VALID")

    def block(y, dw_w, dw_b, pw_w, pw_b, bn_g, bn_b):
        c = y.shape[-1]
        rhs = dw_w.reshape(3, 3, 1, c)
        y = lax.conv_general_dilated(
            y, rhs, (1, 1), ((1, 1), (1, 1)),
            dimension_numbers=("NHWC", "HWIO", "NHWC"),
            feature_group_count=c) + dw_b.reshape(1, 1, 1, c)
        y = jnp.einsum("nhwc,cd->nhwd", y, pw_w) + pw_b.reshape(1, 1, 1, -1)
        mean = jnp.mean(y, axis=(0, 1, 2), keepdims=True)
        var = jnp.mean((y - mean) ** 2, axis=(0, 1, 2), keepdims=True)
        y = (y - mean) / jnp.sqrt(var + _BN_EPS)
        y = y * bn_g.reshape(1, 1, 1, -1) + bn_b.reshape(1, 1, 1, -1)
        return jnp.maximum(y, 0.0)

    y = block(x, params["dw1_w"], params["dw1_b"], params["pw1_w"], params["pw1_b"],
              params["bn1_g"], params["bn1_b"])
    y = block(y, params["dw2_w"], params["dw2_b"], params["pw2_w"], params["pw2_b"],
              params["bn2_g"], params["bn2_b"])
    return jnp.transpose(y, (0, 3, 1, 2))


if __name__ == "__main__":
    N, IN_CH, OUT_CH, H, W = 2, 4, 8, 16, 16

    key = jax.random.PRNGKey(0)
    k_x, k_p = jax.random.split(key)
    x = jax.random.normal(k_x, (N, IN_CH, H, W), jnp.float32)  # NCHW like PyTorch
    params = init_params(k_p, IN_CH, OUT_CH)

    out = jax.block_until_ready(depth_down_pallas(x, params))
    ref = jax.block_until_ready(depth_down_ref(x, params))

    assert out.shape == (N, OUT_CH, H // 2, W // 2), out.shape
    assert jnp.all(jnp.isfinite(out)), "non-finite output"
    assert jnp.allclose(out, ref, atol=2e-2, rtol=2e-2), (
        float(jnp.max(jnp.abs(out - ref))))

    print("KERNEL_OK")
</pallas_src>

<mosaic_0001>
module attributes {stable_mosaic.version = 11 : i64} {
  func.func @depth_down_kernel(%arg0: memref<2x16x8x8xf32, #tpu.memory_space<vmem>>, %arg1: memref<36x8xf32, #tpu.memory_space<vmem>>, %arg2: memref<1x8xf32, #tpu.memory_space<vmem>>, %arg3: memref<1x8xf32, #tpu.memory_space<vmem>>, %arg4: memref<1x8xf32, #tpu.memory_space<vmem>>, %arg5: memref<8x72xf32, #tpu.memory_space<vmem>>, %arg6: memref<8x1xf32, #tpu.memory_space<vmem>>, %arg7: memref<8x1xf32, #tpu.memory_space<vmem>>, %arg8: memref<8x1xf32, #tpu.memory_space<vmem>>, %arg9: memref<8x128xf32, #tpu.memory_space<vmem>>, %arg10: memref<2x10x10x4xf32, #tpu.memory_space<vmem>>, %arg11: memref<2x10x10x8xf32, #tpu.memory_space<vmem>>) attributes {dimension_semantics = [], scalar_prefetch = 0 : i64, scratch_operands = 2 : i64, tpu.core_type = #tpu.core_type<tc>} {
    %c0 = arith.constant 0 : index
    %c0_0 = arith.constant 0 : index
    %c0_1 = arith.constant 0 : index
    %c0_2 = arith.constant 0 : index
    %0 = tpu.strided_load %arg0[%c0, %c0_0, %c0_1, %c0_2] {strides = array<i32: 1, 2, 1, 1>} : memref<2x16x8x8xf32, #tpu.memory_space<vmem>>, vector<2x8x8x8xf32>
    %c0_3 = arith.constant 0 : index
    %c1 = arith.constant 1 : index
    %c0_4 = arith.constant 0 : index
    %c0_5 = arith.constant 0 : index
    %1 = tpu.strided_load %arg0[%c0_3, %c1, %c0_4, %c0_5] {strides = array<i32: 1, 2, 1, 1>} : memref<2x16x8x8xf32, #tpu.memory_space<vmem>>, vector<2x8x8x8xf32>
    %2 = arith.maximumf %0, %1 : vector<2x8x8x8xf32>
    %3 = vector.extract_strided_slice %2 {offsets = [0, 0, 0, 0], sizes = [2, 8, 8, 4], strides = [1, 1, 1, 1]} : vector<2x8x8x8xf32> to vector<2x8x8x4xf32>
    %4 = vector.extract_strided_slice %2 {offsets = [0, 0, 0, 4], sizes = [2, 8, 8, 4], strides = [1, 1, 1, 1]} : vector<2x8x8x8xf32> to vector<2x8x8x4xf32>
    %5 = arith.maximumf %3, %4 : vector<2x8x8x4xf32>
    %c0_6 = arith.constant 0 : index
    %c1_7 = arith.constant 1 : index
    %c1_8 = arith.constant 1 : index
    %c0_9 = arith.constant 0 : index
    %6 = vector.load %arg10[%c0_6, %c1_7, %c1_8, %c0_9] : memref<2x10x10x4xf32, #tpu.memory_space<vmem>>, vector<2x8x8x4xf32>
    tpu.vector_store %arg10[%c0_6, %c1_7, %c1_8, %c0_9], %5 {strides = array<i32>} : memref<2x10x10x4xf32, #tpu.memory_space<vmem>>, vector<2x8x8x4xf32>,
    %cst = arith.constant 0.000000e+00 : f32
    %7 = vector.broadcast %cst : f32 to vector<2x1x10x4xf32>
    %c0_10 = arith.constant 0 : index
    %c0_11 = arith.constant 0 : index
    %c0_12 = arith.constant 0 : index
    %c0_13 = arith.constant 0 : index
    %8 = vector.load %arg10[%c0_10, %c0_11, %c0_12, %c0_13] : memref<2x10x10x4xf32, #tpu.memory_space<vmem>>, vector<2x1x10x4xf32>
    tpu.vector_store %arg10[%c0_10, %c0_11, %c0_12, %c0_13], %7 {strides = array<i32>} : memref<2x10x10x4xf32, #tpu.memory_space<vmem>>, vector<2x1x10x4xf32>,
    %c0_14 = arith.constant 0 : index
    %c9 = arith.constant 9 : index
    %c0_15 = arith.constant 0 : index
    %c0_16 = arith.constant 0 : index
    %9 = vector.load %arg10[%c0_14, %c9, %c0_15, %c0_16] : memref<2x10x10x4xf32, #tpu.memory_space<vmem>>, vector<2x1x10x4xf32>
    tpu.vector_store %arg10[%c0_14, %c9, %c0_15, %c0_16], %7 {strides = array<i32>} : memref<2x10x10x4xf32, #tpu.memory_space<vmem>>, vector<2x1x10x4xf32>,
    %cst_17 = arith.constant 0.000000e+00 : f32
    %10 = vector.broadcast %cst_17 : f32 to vector<2x8x1x4xf32>
    %c0_18 = arith.constant 0 : index
    %c1_19 = arith.constant 1 : index
    %c0_20 = arith.constant 0 : index
    %c0_21 = arith.constant 0 : index
    %11 = vector.load %arg10[%c0_18, %c1_19, %c0_20, %c0_21] : memref<2x10x10x4xf32, #tpu.memory_space<vmem>>, vector<2x8x1x4xf32>
    tpu.vector_store %arg10[%c0_18, %c1_19, %c0_20, %c0_21], %10 {strides = array<i32>} : memref<2x10x10x4xf32, #tpu.memory_space<vmem>>, vector<2x8x1x4xf32>,
    %c0_22 = arith.constant 0 : index
    %c1_23 = arith.constant 1 : index
    %c9_24 = arith.constant 9 : index
    %c0_25 = arith.constant 0 : index
    %12 = vector.load %arg10[%c0_22, %c1_23, %c9_24, %c0_25] : memref<2x10x10x4xf32, #tpu.memory_space<vmem>>, vector<2x8x1x4xf32>
    tpu.vector_store %arg10[%c0_22, %c1_23, %c9_24, %c0_25], %10 {strides = array<i32>} : memref<2x10x10x4xf32, #tpu.memory_space<vmem>>, vector<2x8x1x4xf32>,
    %c0_26 = arith.constant 0 : index
    %c0_27 = arith.constant 0 : index
    %c0_28 = arith.constant 0 : index
    %c0_29 = arith.constant 0 : index
    %13 = vector.load %arg10[%c0_26, %c0_27, %c0_28, %c0_29] : memref<2x10x10x4xf32, #tpu.memory_space<vmem>>, vector<2x8x8x4xf32>
    %14 = vector.shape_cast %13 : vector<2x8x8x4xf32> to vector<128x4xf32>
    %c0_30 = arith.constant 0 : index
    %c0_31 = arith.constant 0 : index
    %c1_32 = arith.constant 1 : index
    %c0_33 = arith.constant 0 : index
    %15 = vector.load %arg10[%c0_30, %c0_31, %c1_32, %c0_33] : memref<2x10x10x4xf32, #tpu.memory_space<vmem>>, vector<2x8x8x4xf32>
    %16 = vector.shape_cast %15 : vector<2x8x8x4xf32> to vector<128x4xf32>
    %c0_34 = arith.constant 0 : index
    %c0_35 = arith.constant 0 : index
    %c2 = arith.constant 2 : index
    %c0_36 = arith.constant 0 : index
    %17 = vector.load %arg10[%c0_34, %c0_35, %c2, %c0_36] : memref<2x10x10x4xf32, #tpu.memory_space<vmem>>, vector<2x8x8x4xf32>
    %18 = vector.shape_cast %17 : vector<2x8x8x4xf32> to vector<128x4xf32>
    %c0_37 = arith.constant 0 : index
    %c1_38 = arith.constant 1 : index
    %c0_39 = arith.constant 0 : index
    %c0_40 = arith.constant 0 : index
    %19 = vector.load %arg10[%c0_37, %c1_38, %c0_39, %c0_40] : memref<2x10x10x4xf32, #tpu.memory_space<vmem>>, vector<2x8x8x4xf32>
    %20 = vector.shape_cast %19 : vector<2x8x8x4xf32> to vector<128x4xf32>
    %c0_41 = arith.constant 0 : index
    %c1_42 = arith.constant 1 : index
    %c1_43 = arith.constant 1 : index
    %c0_44 = arith.constant 0 : index
    %21 = vector.load %arg10[%c0_41, %c1_42, %c1_43, %c0_44] : memref<2x10x10x4xf32, #tpu.memory_space<vmem>>, vector<2x8x8x4xf32>
    %22 = vector.shape_cast %21 : vector<2x8x8x4xf32> to vector<128x4xf32>
    %c0_45 = arith.constant 0 : index
    %c1_46 = arith.constant 1 : index
    %c2_47 = arith.constant 2 : index
    %c0_48 = arith.constant 0 : index
    %23 = vector.load %arg10[%c0_45, %c1_46, %c2_47, %c0_48] : memref<2x10x10x4xf32, #tpu.memory_space<vmem>>, vector<2x8x8x4xf32>
    %24 = vector.shape_cast %23 : vector<2x8x8x4xf32> to vector<128x4xf32>
    %c0_49 = arith.constant 0 : index
    %c2_50 = arith.constant 2 : index
    %c0_51 = arith.constant 0 : index
    %c0_52 = arith.constant 0 : index
    %25 = vector.load %arg10[%c0_49, %c2_50, %c0_51, %c0_52] : memref<2x10x10x4xf32, #tpu.memory_space<vmem>>, vector<2x8x8x4xf32>
    %26 = vector.shape_cast %25 : vector<2x8x8x4xf32> to vector<128x4xf32>
    %c0_53 = arith.constant 0 : index
    %c2_54 = arith.constant 2 : index
    %c1_55 = arith.constant 1 : index
    %c0_56 = arith.constant 0 : index
    %27 = vector.load %arg10[%c0_53, %c2_54, %c1_55, %c0_56] : memref<2x10x10x4xf32, #tpu.memory_space<vmem>>, vector<2x8x8x4xf32>
    %28 = vector.shape_cast %27 : vector<2x8x8x4xf32> to vector<128x4xf32>
    %c0_57 = arith.constant 0 : index
    %c2_58 = arith.constant 2 : index
    %c2_59 = arith.constant 2 : index
    %c0_60 = arith.constant 0 : index
    %29 = vector.load %arg10[%c0_57, %c2_58, %c2_59, %c0_60] : memref<2x10x10x4xf32, #tpu.memory_space<vmem>>, vector<2x8x8x4xf32>
    %30 = vector.shape_cast %29 : vector<2x8x8x4xf32> to vector<128x4xf32>
    %31 = tpu.concatenate %14, %16, %18, %20, %22, %24, %26, %28, %30 in 1 : vector<128x4xf32>, vector<128x4xf32>, vector<128x4xf32>, vector<128x4xf32>, vector<128x4xf32>, vector<128x4xf32>, vector<128x4xf32>, vector<128x4xf32>, vector<128x4xf32> -> vector<128x36xf32>
    %c0_61 = arith.constant 0 : index
    %c0_62 = arith.constant 0 : index
    %32 = vector.load %arg1[%c0_61, %c0_62] : memref<36x8xf32, #tpu.memory_space<vmem>>, vector<36x8xf32>
    %cst_63 = arith.constant dense<0.000000e+00> : vector<128x8xf32>
    %33 = tpu.matmul %31, %32, %cst_63 {dimension_numbers = #tpu.dot_dimension_numbers<[1], [0], [0], [1], [0, 0, 1, 1], [], []>} : vector<128x36xf32>, vector<36x8xf32>, vector<128x8xf32> -> vector<128x8xf32>
    %c0_64 = arith.constant 0 : index
    %c0_65 = arith.constant 0 : index
    %34 = vector.load %arg2[%c0_64, %c0_65] : memref<1x8xf32, #tpu.memory_space<vmem>>, vector<1x8xf32>
    %35 = vector.broadcast %34 : vector<1x8xf32> to vector<128x8xf32>
    %36 = arith.addf %33, %35 : vector<128x8xf32>
    %cst_66 = arith.constant dense<0.000000e+00> : vector<8xf32>
    %37 = vector.multi_reduction <add>, %36, %cst_66 [0] : vector<128x8xf32> to vector<8xf32>
    %38 = vector.shape_cast %37 : vector<8xf32> to vector<1x8xf32>
    %cst_67 = arith.constant 7.812500e-03 : f32
    %39 = vector.broadcast %cst_67 : f32 to vector<1x8xf32>
    %40 = arith.mulf %38, %39 : vector<1x8xf32>
    %41 = vector.broadcast %40 : vector<1x8xf32> to vector<128x8xf32>
    %42 = arith.subf %36, %41 : vector<128x8xf32>
    %43 = arith.mulf %42, %42 : vector<128x8xf32>
    %cst_68 = arith.constant dense<0.000000e+00> : vector<8xf32>
    %44 = vector.multi_reduction <add>, %43, %cst_68 [0] : vector<128x8xf32> to vector<8xf32>
    %45 = vector.shape_cast %44 : vector<8xf32> to vector<1x8xf32>
    %cst_69 = arith.constant 7.812500e-03 : f32
    %46 = vector.broadcast %cst_69 : f32 to vector<1x8xf32>
    %47 = arith.mulf %45, %46 : vector<1x8xf32>
    %c0_70 = arith.constant 0 : index
    %c0_71 = arith.constant 0 : index
    %48 = vector.load %arg3[%c0_70, %c0_71] : memref<1x8xf32, #tpu.memory_space<vmem>>, vector<1x8xf32>
    %cst_72 = arith.constant 9.99999974E-6 : f32
    %49 = vector.broadcast %cst_72 : f32 to vector<1x8xf32>
    %50 = arith.addf %47, %49 : vector<1x8xf32>
    %51 = math.rsqrt %50 : vector<1x8xf32>
    %52 = arith.mulf %48, %51 : vector<1x8xf32>
    %c0_73 = arith.constant 0 : index
    %c0_74 = arith.constant 0 : index
    %53 = vector.load %arg4[%c0_73, %c0_74] : memref<1x8xf32, #tpu.memory_space<vmem>>, vector<1x8xf32>
    %54 = arith.mulf %40, %52 : vector<1x8xf32>
    %55 = arith.subf %53, %54 : vector<1x8xf32>
    %56 = vector.broadcast %52 : vector<1x8xf32> to vector<128x8xf32>
    %57 = arith.mulf %36, %56 : vector<128x8xf32>
    %58 = vector.broadcast %55 : vector<1x8xf32> to vector<128x8xf32>
    %59 = arith.addf %57, %58 : vector<128x8xf32>
    %cst_75 = arith.constant 0.000000e+00 : f32
    %60 = vector.broadcast %cst_75 : f32 to vector<128x8xf32>
    %61 = arith.maximumf %59, %60 : vector<128x8xf32>
    %62 = vector.shape_cast %61 : vector<128x8xf32> to vector<2x8x8x8xf32>
    %c0_76 = arith.constant 0 : index
    %c1_77 = arith.constant 1 : index
    %c1_78 = arith.constant 1 : index
    %c0_79 = arith.constant 0 : index
    %63 = vector.load %arg11[%c0_76, %c1_77, %c1_78, %c0_79] : memref<2x10x10x8xf32, #tpu.memory_space<vmem>>, vector<2x8x8x8xf32>
    tpu.vector_store %arg11[%c0_76, %c1_77, %c1_78, %c0_79], %62 {strides = array<i32>} : memref<2x10x10x8xf32, #tpu.memory_space<vmem>>, vector<2x8x8x8xf32>,
    %cst_80 = arith.constant 0.000000e+00 : f32
    %64 = vector.broadcast %cst_80 : f32 to vector<2x1x10x8xf32>
    %c0_81 = arith.constant 0 : index
    %c0_82 = arith.constant 0 : index
    %c0_83 = arith.constant 0 : index
    %c0_84 = arith.constant 0 : index
    %65 = vector.load %arg11[%c0_81, %c0_82, %c0_83, %c0_84] : memref<2x10x10x8xf32, #tpu.memory_space<vmem>>, vector<2x1x10x8xf32>
    tpu.vector_store %arg11[%c0_81, %c0_82, %c0_83, %c0_84], %64 {strides = array<i32>} : memref<2x10x10x8xf32, #tpu.memory_space<vmem>>, vector<2x1x10x8xf32>,
    %c0_85 = arith.constant 0 : index
    %c9_86 = arith.constant 9 : index
    %c0_87 = arith.constant 0 : index
    %c0_88 = arith.constant 0 : index
    %66 = vector.load %arg11[%c0_85, %c9_86, %c0_87, %c0_88] : memref<2x10x10x8xf32, #tpu.memory_space<vmem>>, vector<2x1x10x8xf32>
    tpu.vector_store %arg11[%c0_85, %c9_86, %c0_87, %c0_88], %64 {strides = array<i32>} : memref<2x10x10x8xf32, #tpu.memory_space<vmem>>, vector<2x1x10x8xf32>,
    %cst_89 = arith.constant 0.000000e+00 : f32
    %67 = vector.broadcast %cst_89 : f32 to vector<2x8x1x8xf32>
    %c0_90 = arith.constant 0 : index
    %c1_91 = arith.constant 1 : index
    %c0_92 = arith.constant 0 : index
    %c0_93 = arith.constant 0 : index
    %68 = vector.load %arg11[%c0_90, %c1_91, %c0_92, %c0_93] : memref<2x10x10x8xf32, #tpu.memory_space<vmem>>, vector<2x8x1x8xf32>
    tpu.vector_store %arg11[%c0_90, %c1_91, %c0_92, %c0_93], %67 {strides = array<i32>} : memref<2x10x10x8xf32, #tpu.memory_space<vmem>>, vector<2x8x1x8xf32>,
    %c0_94 = arith.constant 0 : index
    %c1_95 = arith.constant 1 : index
    %c9_96 = arith.constant 9 : index
    %c0_97 = arith.constant 0 : index
    %69 = vector.load %arg11[%c0_94, %c1_95, %c9_96, %c0_97] : memref<2x10x10x8xf32, #tpu.memory_space<vmem>>, vector<2x8x1x8xf32>
    tpu.vector_store %arg11[%c0_94, %c1_95, %c9_96, %c0_97], %67 {strides = array<i32>} : memref<2x10x10x8xf32, #tpu.memory_space<vmem>>, vector<2x8x1x8xf32>,
    %c0_98 = arith.constant 0 : index
    %c0_99 = arith.constant 0 : index
    %c0_100 = arith.constant 0 : index
    %c0_101 = arith.constant 0 : index
    %70 = vector.load %arg11[%c0_98, %c0_99, %c0_100, %c0_101] : memref<2x10x10x8xf32, #tpu.memory_space<vmem>>, vector<2x8x8x8xf32>
    %71 = vector.shape_cast %70 : vector<2x8x8x8xf32> to vector<128x8xf32>
    %c0_102 = arith.constant 0 : index
    %c0_103 = arith.constant 0 : index
    %c1_104 = arith.constant 1 : index
    %c0_105 = arith.constant 0 : index
    %72 = vector.load %arg11[%c0_102, %c0_103, %c1_104, %c0_105] : memref<2x10x10x8xf32, #tpu.memory_space<vmem>>, vector<2x8x8x8xf32>
    %73 = vector.shape_cast %72 : vector<2x8x8x8xf32> to vector<128x8xf32>
    %c0_106 = arith.constant 0 : index
    %c0_107 = arith.constant 0 : index
    %c2_108 = arith.constant 2 : index
    %c0_109 = arith.constant 0 : index
    %74 = vector.load %arg11[%c0_106, %c0_107, %c2_108, %c0_109] : memref<2x10x10x8xf32, #tpu.memory_space<vmem>>, vector<2x8x8x8xf32>
    %75 = vector.shape_cast %74 : vector<2x8x8x8xf32> to vector<128x8xf32>
    %c0_110 = arith.constant 0 : index
    %c1_111 = arith.constant 1 : index
    %c0_112 = arith.constant 0 : index
    %c0_113 = arith.constant 0 : index
    %76 = vector.load %arg11[%c0_110, %c1_111, %c0_112, %c0_113] : memref<2x10x10x8xf32, #tpu.memory_space<vmem>>, vector<2x8x8x8xf32>
    %77 = vector.shape_cast %76 : vector<2x8x8x8xf32> to vector<128x8xf32>
    %c0_114 = arith.constant 0 : index
    %c1_115 = arith.constant 1 : index
    %c1_116 = arith.constant 1 : index
    %c0_117 = arith.constant 0 : index
    %78 = vector.load %arg11[%c0_114, %c1_115, %c1_116, %c0_117] : memref<2x10x10x8xf32, #tpu.memory_space<vmem>>, vector<2x8x8x8xf32>
    %79 = vector.shape_cast %78 : vector<2x8x8x8xf32> to vector<128x8xf32>
    %c0_118 = arith.constant 0 : index
    %c1_119 = arith.constant 1 : index
    %c2_120 = arith.constant 2 : index
    %c0_121 = arith.constant 0 : index
    %80 = vector.load %arg11[%c0_118, %c1_119, %c2_120, %c0_121] : memref<2x10x10x8xf32, #tpu.memory_space<vmem>>, vector<2x8x8x8xf32>
    %81 = vector.shape_cast %80 : vector<2x8x8x8xf32> to vector<128x8xf32>
    %c0_122 = arith.constant 0 : index
    %c2_123 = arith.constant 2 : index
    %c0_124 = arith.constant 0 : index
    %c0_125 = arith.constant 0 : index
    %82 = vector.load %arg11[%c0_122, %c2_123, %c0_124, %c0_125] : memref<2x10x10x8xf32, #tpu.memory_space<vmem>>, vector<2x8x8x8xf32>
    %83 = vector.shape_cast %82 : vector<2x8x8x8xf32> to vector<128x8xf32>
    %c0_126 = arith.constant 0 : index
    %c2_127 = arith.constant 2 : index
    %c1_128 = arith.constant 1 : index
    %c0_129 = arith.constant 0 : index
    %84 = vector.load %arg11[%c0_126, %c2_127, %c1_128, %c0_129] : memref<2x10x10x8xf32, #tpu.memory_space<vmem>>, vector<2x8x8x8xf32>
    %85 = vector.shape_cast %84 : vector<2x8x8x8xf32> to vector<128x8xf32>
    %c0_130 = arith.constant 0 : index
    %c2_131 = arith.constant 2 : index
    %c2_132 = arith.constant 2 : index
    %c0_133 = arith.constant 0 : index
    %86 = vector.load %arg11[%c0_130, %c2_131, %c2_132, %c0_133] : memref<2x10x10x8xf32, #tpu.memory_space<vmem>>, vector<2x8x8x8xf32>
    %87 = vector.shape_cast %86 : vector<2x8x8x8xf32> to vector<128x8xf32>
    %88 = tpu.concatenate %71, %73, %75, %77, %79, %81, %83, %85, %87 in 1 : vector<128x8xf32>, vector<128x8xf32>, vector<128x8xf32>, vector<128x8xf32>, vector<128x8xf32>, vector<128x8xf32>, vector<128x8xf32>, vector<128x8xf32>, vector<128x8xf32> -> vector<128x72xf32>
    %c0_134 = arith.constant 0 : index
    %c0_135 = arith.constant 0 : index
    %89 = vector.load %arg5[%c0_134, %c0_135] : memref<8x72xf32, #tpu.memory_space<vmem>>, vector<8x72xf32>
    %cst_136 = arith.constant dense<0.000000e+00> : vector<8x128xf32>
    %90 = tpu.matmul %89, %88, %cst_136 {dimension_numbers = #tpu.dot_dimension_numbers<[1], [1], [0], [0], [0, 0, 1, 0], [], []>} : vector<8x72xf32>, vector<128x72xf32>, vector<8x128xf32> -> vector<8x128xf32>
    %c0_137 = arith.constant 0 : index
    %c0_138 = arith.constant 0 : index
    %91 = vector.load %arg6[%c0_137, %c0_138] : memref<8x1xf32, #tpu.memory_space<vmem>>, vector<8x1xf32>
    %92 = vector.broadcast %91 : vector<8x1xf32> to vector<8x128xf32>
    %93 = arith.addf %90, %92 : vector<8x128xf32>
    %cst_139 = arith.constant dense<0.000000e+00> : vector<8xf32>
    %94 = vector.multi_reduction <add>, %93, %cst_139 [1] : vector<8x128xf32> to vector<8xf32>
    %95 = vector.shape_cast %94 : vector<8xf32> to vector<8x1xf32>
    %cst_140 = arith.constant 1.280000e+02 : f32
    %96 = vector.broadcast %cst_140 : f32 to vector<8x1xf32>
    %97 = arith.divf %95, %96 : vector<8x1xf32>
    %98 = vector.broadcast %97 : vector<8x1xf32> to vector<8x128xf32>
    %99 = arith.subf %93, %98 : vector<8x128xf32>
    %100 = arith.mulf %99, %99 : vector<8x128xf32>
    %cst_141 = arith.constant dense<0.000000e+00> : vector<8xf32>
    %101 = vector.multi_reduction <add>, %100, %cst_141 [1] : vector<8x128xf32> to vector<8xf32>
    %102 = vector.shape_cast %101 : vector<8xf32> to vector<8x1xf32>
    %cst_142 = arith.constant 1.280000e+02 : f32
    %103 = vector.broadcast %cst_142 : f32 to vector<8x1xf32>
    %104 = arith.divf %102, %103 : vector<8x1xf32>
    %c0_143 = arith.constant 0 : index
    %c0_144 = arith.constant 0 : index
    %105 = vector.load %arg7[%c0_143, %c0_144] : memref<8x1xf32, #tpu.memory_space<vmem>>, vector<8x1xf32>
    %cst_145 = arith.constant 9.99999974E-6 : f32
    %106 = vector.broadcast %cst_145 : f32 to vector<8x1xf32>
    %107 = arith.addf %104, %106 : vector<8x1xf32>
    %108 = math.rsqrt %107 : vector<8x1xf32>
    %109 = arith.mulf %105, %108 : vector<8x1xf32>
    %c0_146 = arith.constant 0 : index
    %c0_147 = arith.constant 0 : index
    %110 = vector.load %arg8[%c0_146, %c0_147] : memref<8x1xf32, #tpu.memory_space<vmem>>, vector<8x1xf32>
    %111 = arith.mulf %97, %109 : vector<8x1xf32>
    %112 = arith.subf %110, %111 : vector<8x1xf32>
    %113 = vector.broadcast %109 : vector<8x1xf32> to vector<8x128xf32>
    %114 = arith.mulf %93, %113 : vector<8x128xf32>
    %115 = vector.broadcast %112 : vector<8x1xf32> to vector<8x128xf32>
    %116 = arith.addf %114, %115 : vector<8x128xf32>
    %cst_148 = arith.constant 0.000000e+00 : f32
    %117 = vector.broadcast %cst_148 : f32 to vector<8x128xf32>
    %118 = arith.maximumf %116, %117 : vector<8x128xf32>
    %c0_149 = arith.constant 0 : index
    %c0_150 = arith.constant 0 : index
    %119 = vector.load %arg9[%c0_149, %c0_150] : memref<8x128xf32, #tpu.memory_space<vmem>>, vector<8x128xf32>
    tpu.vector_store %arg9[%c0_149, %c0_150], %118 {strides = array<i32>} : memref<8x128xf32, #tpu.memory_space<vmem>>, vector<8x128xf32>,
    return
  }
}

</mosaic_0001>

<bundles_post_ra>
// kernel: tpu_custom_call.1
= control target key start
LH: loop header
LB: loop body
LE: loop exit
PB: predicated region body
PF: predicated region fallthrough
CT: control target
= control target key end

     0   :  { %vm163_vm0 = vcmask 31744   ;;  %v2988_v7 = vmov 0.0   ;;  %vm181_vm1 = vcmask 25600   ;;  %vm190_vm2 = vcmask 24576   ;;  %s2989_s25 = smov 124   ;;  %s4344_s0 = inlined_call_operand.vmem [shape: f32[2,16,8,8], index: 0, kind: input, shape index: {}]   ;;  %s4345_s1 = inlined_call_operand.vmem [shape: f32[36,8], index: 1, kind: input, shape index: {}]   ;;  %s4346_s2 = inlined_call_operand.vmem [shape: f32[1,8], index: 2, kind: input, shape index: {}]   ;;  %s4347_s3 = inlined_call_operand.vmem [shape: f32[1,8], index: 3, kind: input, shape index: {}]   ;;  %s4348_s4 = inlined_call_operand.vmem [shape: f32[1,8], index: 4, kind: input, shape index: {}]   ;;  %s4349_s5 = inlined_call_operand.vmem [shape: f32[8,72], index: 5, kind: input, shape index: {}]   ;;  %s4350_s6 = inlined_call_operand.vmem [shape: f32[8,1], index: 6, kind: input, shape index: {}]   ;;  %s4351_s7 = inlined_call_operand.vmem [shape: f32[8,1], index: 7, kind: input, shape index: {}]   ;;  %s4352_s8 = inlined_call_operand.vmem [shape: f32[8,1], index: 8, kind: input, shape index: {}]   ;;  %s4353_s9 = inlined_call_operand.hbm [shape: f32[8,128], index: 9, kind: output, shape index: {}]  }
   0x1   :  { %v33_v0 = vld [vmem:[%s4344_s0] sm:$0xff]  ;;  %v2422_v1 = vld [vmem:[%s4344_s0 + $0x8] sm:$0xff]  ;;  %v34_v2 = vld [vmem:[%s4344_s0 + $0x10] sm:$0xff]  ;;  %180 = vst.msk [vmem:[#allocation2] sm:$0xff] %vm163_vm0, %v2988_v7 }
   0x2   :  { %v3065_v3 = vmax.f32 %v33_v0, %v2422_v1  ;;  %v2423_v4 = vld [vmem:[%s4344_s0 + $0x18] sm:$0xff]  ;;  %v35_v5 = vld [vmem:[%s4344_s0 + $0x20] sm:$0xff]  ;;  %v2424_v6 = vld [vmem:[%s4344_s0 + $0x28] sm:$0xff]  ;;  %183 = vst.msk [vmem:[#allocation2 + $0xa0] sm:$0xff] %vm163_vm0, %v2988_v7 }
   0x3   :  { %186 = vst.msk [vmem:[#allocation2 + $0x90] sm:$0xff] %vm163_vm0, %v2988_v7  ;;  %188 = vst.msk [vmem:[#allocation2 + $0x130] sm:$0xff] %vm163_vm0, %v2988_v7  ;;  %v3084_v8 = vmax.f32 %v35_v5, %v2424_v6  ;;  %v36_v9 = vld [vmem:[%s4344_s0 + $0x30] sm:$0xff]  ;;  %v2425_v10 = vld [vmem:[%s4344_s0 + $0x38] sm:$0xff]  ;;  %v3098_v11 = vmax.f32 %v34_v2, %v2423_v4 }
   0x4   :  { %182 = vst.msk [vmem:[#allocation2 + $0x8] sm:$0x3] %vm181_vm1, %v2988_v7  ;;  %184 = vst.msk [vmem:[#allocation2 + $0xa8] sm:$0x3] %vm181_vm1, %v2988_v7  ;;  %98 = vrot.lane.b32.xlu0 %v3065_v3, %s2989_s25  ;;  %v3166_v12 = vmax.f32 %v36_v9, %v2425_v10  ;;  %v37_v13 = vld [vmem:[%s4344_s0 + $0x40] sm:$0xff]  ;;  %v2426_v14 = vld [vmem:[%s4344_s0 + $0x48] sm:$0xff] }
   0x5   :  { %187 = vst.msk [vmem:[#allocation2 + $0x98] sm:$0x3] %vm181_vm1, %v2988_v7  ;;  %189 = vst.msk [vmem:[#allocation2 + $0x138] sm:$0x3] %vm181_vm1, %v2988_v7  ;;  %102 = vrot.lane.b32.xlu1 %v3084_v8, %s2989_s25  ;;  %v38_v15 = vld [vmem:[%s4344_s0 + $0x50] sm:$0xff]  ;;  %v2427_v16 = vld [vmem:[%s4344_s0 + $0x58] sm:$0xff]  ;;  %v3182_v17 = vmax.f32 %v37_v13, %v2426_v14 }
   0x6   :  { %191 = vst.msk [vmem:[#allocation2 + $0x10] sm:$0x1] %vm190_vm2, %v2988_v7  ;;  %192 = vst.msk [vmem:[#allocation2 + $0x20] sm:$0x1] %vm190_vm2, %v2988_v7  ;;  %v3186_v18 = vmax.f32 %v38_v15, %v2427_v16  ;;  %v39_v19 = vld [vmem:[%s4344_s0 + $0x60] sm:$0xff]  ;;  %v2428_v20 = vld [vmem:[%s4344_s0 + $0x68] sm:$0xff] }
   0x7   :  { %193 = vst.msk [vmem:[#allocation2 + $0x30] sm:$0x1] %vm190_vm2, %v2988_v7  ;;  %194 = vst.msk [vmem:[#allocation2 + $0x40] sm:$0x1] %vm190_vm2, %v2988_v7  ;;  %v40_v21 = vld [vmem:[%s4344_s0 + $0x70] sm:$0xff]  ;;  %v2429_v22 = vld [vmem:[%s4344_s0 + $0x78] sm:$0xff]  ;;  %v3202_v23 = vmax.f32 %v39_v19, %v2428_v20 }
   0x8   :  { %195 = vst.msk [vmem:[#allocation2 + $0x50] sm:$0x1] %vm190_vm2, %v2988_v7  ;;  %196 = vst.msk [vmem:[#allocation2 + $0x60] sm:$0x1] %vm190_vm2, %v2988_v7  ;;  %100 = vrot.lane.b32.xlu0 %v3098_v11, %s2989_s25 }
   0x9   :  { %197 = vst.msk [vmem:[#allocation2 + $0x70] sm:$0x1] %vm190_vm2, %v2988_v7  ;;  %198 = vst.msk [vmem:[#allocation2 + $0x80] sm:$0x1] %vm190_vm2, %v2988_v7  ;;  %104 = vrot.lane.b32.xlu1 %v3166_v12, %s2989_s25 }
   0xa   :  { %199 = vst.msk [vmem:[#allocation2 + $0xb0] sm:$0x1] %vm190_vm2, %v2988_v7  ;;  %200 = vst.msk [vmem:[#allocation2 + $0xc0] sm:$0x1] %vm190_vm2, %v2988_v7 }
   0xb   :  { %201 = vst.msk [vmem:[#allocation2 + $0xd0] sm:$0x1] %vm190_vm2, %v2988_v7  ;;  %202 = vst.msk [vmem:[#allocation2 + $0xe0] sm:$0x1] %vm190_vm2, %v2988_v7 }
   0xc   :  { %203 = vst.msk [vmem:[#allocation2 + $0xf0] sm:$0x1] %vm190_vm2, %v2988_v7  ;;  %204 = vst.msk [vmem:[#allocation2 + $0x100] sm:$0x1] %vm190_vm2, %v2988_v7  ;;  %106 = vrot.lane.b32.xlu0 %v3182_v17, %s2989_s25 }
   0xd   :  { %205 = vst.msk [vmem:[#allocation2 + $0x110] sm:$0x1] %vm190_vm2, %v2988_v7  ;;  %206 = vst.msk [vmem:[#allocation2 + $0x120] sm:$0x1] %vm190_vm2, %v2988_v7 }
   0xe   :  { %207 = vst.msk [vmem:[#allocation2 + $0x19] sm:$0x1] %vm190_vm2, %v2988_v7  ;;  %208 = vst.msk [vmem:[#allocation2 + $0x29] sm:$0x1] %vm190_vm2, %v2988_v7 }
   0xf   :  { %209 = vst.msk [vmem:[#allocation2 + $0x39] sm:$0x1] %vm190_vm2, %v2988_v7  ;;  %210 = vst.msk [vmem:[#allocation2 + $0x49] sm:$0x1] %vm190_vm2, %v2988_v7 }
  0x10   :  { %211 = vst.msk [vmem:[#allocation2 + $0x59] sm:$0x1] %vm190_vm2, %v2988_v7  ;;  %212 = vst.msk [vmem:[#allocation2 + $0x69] sm:$0x1] %vm190_vm2, %v2988_v7 }
  0x11   :  { %213 = vst.msk [vmem:[#allocation2 + $0x79] sm:$0x1] %vm190_vm2, %v2988_v7  ;;  %214 = vst.msk [vmem:[#allocation2 + $0x89] sm:$0x1] %vm190_vm2, %v2988_v7 }
  0x12   :  { %215 = vst.msk [vmem:[#allocation2 + $0xb9] sm:$0x1] %vm190_vm2, %v2988_v7  ;;  %216 = vst.msk [vmem:[#allocation2 + $0xc9] sm:$0x1] %vm190_vm2, %v2988_v7 }
  0x13   :  { %217 = vst.msk [vmem:[#allocation2 + $0xd9] sm:$0x1] %vm190_vm2, %v2988_v7  ;;  %218 = vst.msk [vmem:[#allocation2 + $0xe9] sm:$0x1] %vm190_vm2, %v2988_v7 }
  0x14   :  { %219 = vst.msk [vmem:[#allocation2 + $0xf9] sm:$0x1] %vm190_vm2, %v2988_v7  ;;  %220 = vst.msk [vmem:[#allocation2 + $0x109] sm:$0x1] %vm190_vm2, %v2988_v7 }
  0x15   :  { %221 = vst.msk [vmem:[#allocation2 + $0x119] sm:$0x1] %vm190_vm2, %v2988_v7  ;;  %222 = vst.msk [vmem:[#allocation2 + $0x129] sm:$0x1] %vm190_vm2, %v2988_v7 }
  0x16   :  { %14 = vsyncpa [#allocation5], 0  ;;  %108 = vrot.lane.b32.xlu1 %v3186_v18, %s2989_s25  ;;  %v3206_v24 = vmax.f32 %v40_v21, %v2429_v22  ;;  %v41_v25 = vld [vmem:[%s4344_s0 + $0x80] sm:$0xff]  ;;  %v2430_v26 = vld [vmem:[%s4344_s0 + $0x88] sm:$0xff]  ;;  %110 = vrot.lane.b32.xlu0 %v3202_v23, %s2989_s25  ;;  %s2990_s13 = smov 4   ;;  %vm896_vm3 = vcmask 64512  }
  0x17   :  { %v42_v27 = vld [vmem:[%s4344_s0 + $0x90] sm:$0xff]  ;;  %v2431_v28 = vld [vmem:[%s4344_s0 + $0x98] sm:$0xff]  ;;  %v3222_v29 = vmax.f32 %v41_v25, %v2430_v26  ;;  %v43_v30 = vld [vmem:[%s4344_s0 + $0xa0] sm:$0xff]  ;;  %1417 = vst.msk [vmem:[#allocation3] sm:$0xff] %vm896_vm3, %v2988_v7  ;;  %s2993_s14 = smov 16   ;;  %s2994_s15 = smov 20  }
  0x18   :  { %v2432_v31 = vld [vmem:[%s4344_s0 + $0xa8] sm:$0xff]  ;;  %v3232_v32 = vmax.f32 %v42_v27, %v2431_v28  ;;  %v44_v33 = vld [vmem:[%s4344_s0 + $0xb0] sm:$0xff]  ;;  %v2433_v34 = vld [vmem:[%s4344_s0 + $0xb8] sm:$0xff]  ;;  %1420 = vst.msk [vmem:[#allocation3 + $0xa0] sm:$0xff] %vm896_vm3, %v2988_v7  ;;  %s2995_s20 = smov 24   ;;  %s2996_s26 = smov 28  }
  0x19   :  { %v3242_v35 = vmax.f32 %v43_v30, %v2432_v31  ;;  %v45_v36 = vld [vmem:[%s4344_s0 + $0xc0] sm:$0xff]  ;;  %v2434_v37 = vld [vmem:[%s4344_s0 + $0xc8] sm:$0xff]  ;;  %v3252_v38 = vmax.f32 %v44_v33, %v2433_v34  ;;  %v46_v39 = vld [vmem:[%s4344_s0 + $0xd0] sm:$0xff]  ;;  %1423 = vst.msk [vmem:[#allocation3 + $0x90] sm:$0xff] %vm896_vm3, %v2988_v7  ;;  %vm1076_vm4 = vcmask 1043456   ;;  %s2997_s29 = smov 32  }
  0x1a   :  { %112 = vrot.lane.b32.xlu1 %v3206_v24, %s2989_s25  ;;  %114 = vrot.lane.b32.xlu0 %v3222_v29, %s2989_s25  ;;  %v2435_v40 = vld [vmem:[%s4344_s0 + $0xd8] sm:$0xff]  ;;  %v3262_v41 = vmax.f32 %v45_v36, %v2434_v37  ;;  %v47_v42 = vld [vmem:[%s4344_s0 + $0xe0] sm:$0xff]  ;;  %1425 = vst.msk [vmem:[#allocation3 + $0x130] sm:$0xff] %vm896_vm3, %v2988_v7  ;;  %vm913_vm5 = vcmask 97280   ;;  %vm930_vm6 = vcmask 130048   ;;  %vm947_vm7 = vcmask 162816  }
  0x1b   :  { %v2436_v43 = vld [vmem:[%s4344_s0 + $0xe8] sm:$0xff]  ;;  %v3272_v44 = vmax.f32 %v46_v39, %v2435_v40  ;;  %v48_v45 = vld [vmem:[%s4344_s0 + $0xf0] sm:$0xff]  ;;  %v2437_v46 = vld [vmem:[%s4344_s0 + $0xf8] sm:$0xff]  ;;  %s2991_s0 = smov 8   ;;  %vm964_vm8 = vcmask 195584   ;;  %vm981_vm9 = vcmask 228352  }
  0x1c   :  { %v3282_v47 = vmax.f32 %v47_v42, %v2436_v43  ;;  %v3286_v48 = vmax.f32 %v48_v45, %v2437_v46  ;;  %v239_v49 = vld [vmem:[#allocation2 + $0x1] sm:$0xff]  ;;  %v1017_v33 = vld [vmem:[%s4345_s1 + $0x10] sm:$0xff]  ;;  %v1018_v34 = vld [vmem:[%s4345_s1 + $0x18] sm:$0xff]  ;;  %vm998_vm10 = vcmask 261120   ;;  %vm1027_vm11 = vcmask 293888   ;;  %s3005_s19 = smov [#allocation4]  }
  0x1d   :  { %v255_v50 = vld [vmem:[#allocation2 + $0x2] sm:$0xff]  ;;  %vm1418_vm12 = vcmask 58368   ;;  %vm1427_vm13 = vcmask 57344   ;;  %vm3003_vm14 = vmmov 0   ;;  %vm2181_vm15 = vcmask 326656  }
  0x1e   :  { %116 = vrot.lane.b32.xlu1 %v3232_v32, %s2989_s25  ;;  %118 = vrot.lane.b32.xlu0 %v3242_v35, %s2989_s25  ;;  %v1016_v30 = vld [vmem:[%s4345_s1 + $0x8] sm:$0xff]  ;;  %v1019_v36 = vld [vmem:[%s4345_s1 + $0x20] sm:$0xf]  ;;  %1419 = vst.msk [vmem:[#allocation3 + $0x8] sm:$0x3] %vm1418_vm12, %v2988_v7  ;;  %vm2215_vm1 = vcmask 457728  }
  0x1f   :  { %1444 = vst.msk [vmem:[#allocation3 + $0x19] sm:$0x1] %vm1427_vm13, %v2988_v7  ;;  %1428 = vst.msk [vmem:[#allocation3 + $0x10] sm:$0x1] %vm1427_vm13, %v2988_v7  ;;  %2577 = vmatprep.mubr.msk.f32.mxu1 %vm3003_vm14, %v2988_v7  ;;  %vm2232_vm2 = vcmask 523264  }
  0x20   :  { %1421 = vst.msk [vmem:[#allocation3 + $0xa8] sm:$0x3] %vm1418_vm12, %v2988_v7  ;;  %1424 = vst.msk [vmem:[#allocation3 + $0x98] sm:$0x3] %vm1418_vm12, %v2988_v7 }
  0x21   :  { %1426 = vst.msk [vmem:[#allocation3 + $0x138] sm:$0x3] %vm1418_vm12, %v2988_v7 }
  0x22   :  { %120 = vrot.lane.b32.xlu1 %v3252_v38, %s2989_s25  ;;  %122 = vrot.lane.b32.xlu0 %v3262_v41, %s2989_s25  ;;  %1429 = vst.msk [vmem:[#allocation3 + $0x20] sm:$0x1] %vm1427_vm13, %v2988_v7  ;;  %1430 = vst.msk [vmem:[#allocation3 + $0x30] sm:$0x1] %vm1427_vm13, %v2988_v7 }
  0x23   :  { %1431 = vst.msk [vmem:[#allocation3 + $0x40] sm:$0x1] %vm1427_vm13, %v2988_v7  ;;  %1432 = vst.msk [vmem:[#allocation3 + $0x50] sm:$0x1] %vm1427_vm13, %v2988_v7 }
  0x24   :  { %1433 = vst.msk [vmem:[#allocation3 + $0x60] sm:$0x1] %vm1427_vm13, %v2988_v7  ;;  %1434 = vst.msk [vmem:[#allocation3 + $0x70] sm:$0x1] %vm1427_vm13, %v2988_v7 }
  0x25   :  { %1435 = vst.msk [vmem:[#allocation3 + $0x80] sm:$0x1] %vm1427_vm13, %v2988_v7  ;;  %1436 = vst.msk [vmem:[#allocation3 + $0xb0] sm:$0x1] %vm1427_vm13, %v2988_v7 }
  0x26   :  { %124 = vrot.lane.b32.xlu1 %v3272_v44, %s2989_s25  ;;  %126 = vrot.lane.b32.xlu0 %v3282_v47, %s2989_s25  ;;  %1437 = vst.msk [vmem:[#allocation3 + $0xc0] sm:$0x1] %vm1427_vm13, %v2988_v7  ;;  %1438 = vst.msk [vmem:[#allocation3 + $0xd0] sm:$0x1] %vm1427_vm13, %v2988_v7 }
  0x27   :  { %1439 = vst.msk [vmem:[#allocation3 + $0xe0] sm:$0x1] %vm1427_vm13, %v2988_v7  ;;  %1440 = vst.msk [vmem:[#allocation3 + $0xf0] sm:$0x1] %vm1427_vm13, %v2988_v7 }
  0x28   :  { %1441 = vst.msk [vmem:[#allocation3 + $0x100] sm:$0x1] %vm1427_vm13, %v2988_v7  ;;  %1442 = vst.msk [vmem:[#allocation3 + $0x110] sm:$0x1] %vm1427_vm13, %v2988_v7 }
  0x29   :  { %1443 = vst.msk [vmem:[#allocation3 + $0x120] sm:$0x1] %vm1427_vm13, %v2988_v7  ;;  %1445 = vst.msk [vmem:[#allocation3 + $0x29] sm:$0x1] %vm1427_vm13, %v2988_v7 }
  0x2a   :  { %128 = vrot.lane.b32.xlu1 %v3286_v48, %s2989_s25  ;;  %384 = vrot.lane.b32.xlu0 %v239_v49, %s2990_s13  ;;  %s2992_s25 = smov 12   ;;  %v247_v49 = vld [vmem:[#allocation2 + $0xa1] sm:$0xff]  ;;  %1446 = vst.msk [vmem:[#allocation3 + $0x39] sm:$0x1] %vm1427_vm13, %v2988_v7  ;;  %1447 = vst.msk [vmem:[#allocation3 + $0x49] sm:$0x1] %vm1427_vm13, %v2988_v7 }
  0x2b   :  { %1448 = vst.msk [vmem:[#allocation3 + $0x59] sm:$0x1] %vm1427_vm13, %v2988_v7  ;;  %1449 = vst.msk [vmem:[#allocation3 + $0x69] sm:$0x1] %vm1427_vm13, %v2988_v7 }
  0x2c   :  { %1450 = vst.msk [vmem:[#allocation3 + $0x79] sm:$0x1] %vm1427_vm13, %v2988_v7  ;;  %1451 = vst.msk [vmem:[#allocation3 + $0x89] sm:$0x1] %vm1427_vm13, %v2988_v7 }
  0x2d   :  { %1452 = vst.msk [vmem:[#allocation3 + $0xb9] sm:$0x1] %vm1427_vm13, %v2988_v7  ;;  %1453 = vst.msk [vmem:[#allocation3 + $0xc9] sm:$0x1] %vm1427_vm13, %v2988_v7 }
  0x2e   :  { %448 = vrot.lane.b32.xlu0 %v255_v50, %s2991_s0  ;;  %1454 = vst.msk [vmem:[#allocation3 + $0xd9] sm:$0x1] %vm1427_vm13, %v2988_v7  ;;  %1455 = vst.msk [vmem:[#allocation3 + $0xe9] sm:$0x1] %vm1427_vm13, %v2988_v7 }
  0x2f   :  { %1456 = vst.msk [vmem:[#allocation3 + $0xf9] sm:$0x1] %vm1427_vm13, %v2988_v7  ;;  %1457 = vst.msk [vmem:[#allocation3 + $0x109] sm:$0x1] %vm1427_vm13, %v2988_v7 }
  0x30   :  { %1458 = vst.msk [vmem:[#allocation3 + $0x119] sm:$0x1] %vm1427_vm13, %v2988_v7  ;;  %1459 = vst.msk [vmem:[#allocation3 + $0x129] sm:$0x1] %vm1427_vm13, %v2988_v7 }
  0x76   :  { %v99_v51 = vpop.permute.xlu0 %98 }
  0x77   :  { %v146_v52 = vmax.f32 %v3065_v3, %v99_v51  ;;  %v103_v53 = vpop.permute.xlu1 %102 }
  0x78   :  { %v148_v54 = vmax.f32 %v3084_v8, %v103_v53 }
  0x79   :  { %164 = vst.msk [vmem:[#allocation2 + $0x11] sm:$0xff] %vm163_vm0, %v146_v52 }
  0x7a   :  { %v101_v55 = vpop.permute.xlu0 %100  ;;  %166 = vst.msk [vmem:[#allocation2 + $0x31] sm:$0xff] %vm163_vm0, %v148_v54 }
  0x7b   :  { %v147_v56 = vmax.f32 %v3098_v11, %v101_v55  ;;  %v105_v57 = vpop.permute.xlu1 %104  ;;  %v263_v55 = vld [vmem:[#allocation2 + $0xa2] sm:$0xff] }
  0x7c   :  { %v149_v58 = vmax.f32 %v3166_v12, %v105_v57 }
  0x7d   :  { %165 = vst.msk [vmem:[#allocation2 + $0x21] sm:$0xff] %vm163_vm0, %v147_v56 }
  0x7e   :  { %167 = vst.msk [vmem:[#allocation2 + $0x41] sm:$0xff] %vm163_vm0, %v149_v58  ;;  %v107_v59 = vpop.permute.xlu0 %106 }
  0x7f   :  { %v150_v60 = vmax.f32 %v3182_v17, %v107_v59  ;;  %v327_v59 = vld [vmem:[#allocation2 + $0x90] sm:$0xff] }
  0x80   :  { %v3311_v62 = vld [vmem:[#allocation2 + $0x10] sm:$0xff] }
  0x81   :  { %v240_v63 = vld [vmem:[#allocation2 + $0x11] sm:$0xff]  ;;  %512 = vrot.lane.b32.xlu0 %v3311_v62, %s2992_s25  ;;  %168 = vst.msk [vmem:[#allocation2 + $0x51] sm:$0xff] %vm163_vm0, %v150_v60 }
  0x82   :  { %386 = vrot.lane.b32.xlu1 %v240_v63, %s2990_s13  ;;  %v256_v4 = vld [vmem:[#allocation2 + $0x12] sm:$0xff] }
  0x83   :  { %v242_v13 = vld [vmem:[#allocation2 + $0x31] sm:$0xff] }
  0x84   :  { %v288_v6 = vld [vmem:[#allocation2 + $0x21] sm:$0xff]  ;;  %v3352_v28 = vld [vmem:[#allocation2 + $0x30] sm:$0xff] }
  0x85   :  { %576 = vrot.lane.b32.xlu0 %v240_v63, %s2993_s14  ;;  %v3324_v8 = vld [vmem:[#allocation2 + $0x20] sm:$0xff] }
  0x86   :  { %450 = vrot.lane.b32.xlu1 %v256_v4, %s2991_s0  ;;  %v304_v21 = vld [vmem:[#allocation2 + $0x22] sm:$0xff] }
  0x87   :  { %v243_v37 = vld [vmem:[#allocation2 + $0x41] sm:$0xff] }
  0x88   :  { %v109_v61 = vpop.permute.xlu1 %108  ;;  %v111_v1 = vpop.permute.xlu0 %110  ;;  %v306_v39 = vld [vmem:[#allocation2 + $0x42] sm:$0xff]  ;;  %v260_v40 = vld [vmem:[#allocation2 + $0x52] sm:$0xff] }
  0x89   :  { %v151_v0 = vmax.f32 %v3186_v18, %v109_v61  ;;  %v152_v2 = vmax.f32 %v3202_v23, %v111_v1  ;;  %578 = vrot.lane.b32.xlu0 %v288_v6, %s2993_s14  ;;  %v258_v23 = vld [vmem:[#allocation2 + $0x32] sm:$0xff] }
  0x8a   :  { %514 = vrot.lane.b32.xlu1 %v3324_v8, %s2992_s25 }
  0x8b   :  { %169 = vst.msk [vmem:[#allocation2 + $0x61] sm:$0xff] %vm163_vm0, %v151_v0  ;;  %170 = vst.msk [vmem:[#allocation2 + $0x71] sm:$0xff] %vm163_vm0, %v152_v2 }
  0x8c   :  { %v113_v3 = vpop.permute.xlu1 %112  ;;  %v115_v9 = vpop.permute.xlu0 %114 }
  0x8d   :  { %v153_v5 = vmax.f32 %v3206_v24, %v113_v3  ;;  %v154_v10 = vmax.f32 %v3222_v29, %v115_v9  ;;  %390 = vrot.lane.b32.xlu0 %v242_v13, %s2990_s13  ;;  %v1015_v29 = vld [vmem:[%s4345_s1] sm:$0xff]  ;;  %v343_v3 = vld [vmem:[#allocation2 + $0x91] sm:$0xff] }
  0x8e   :  { %388 = vrot.lane.b32.xlu1 %v288_v6, %s2990_s13  ;;  %v2580_v31 = vpack.c.bf16 %v1016_v30, %v1015_v29 }
  0x8f   :  { %171 = vst.msk [vmem:[#allocation2 + $0x81] sm:$0xff] %vm163_vm0, %v153_v5  ;;  %172 = vst.msk [vmem:[#allocation2 + $0xb1] sm:$0xff] %vm163_vm0, %v154_v10 }
  0x90   :  { %v117_v11 = vpop.permute.xlu1 %116  ;;  %v119_v14 = vpop.permute.xlu0 %118  ;;  %2581 = vmatprep.subr.bf16.mxu0 %v2580_v31 }
  0x91   :  { %v155_v12 = vmax.f32 %v3232_v32, %v117_v11  ;;  %v156_v15 = vmax.f32 %v3242_v35, %v119_v14  ;;  %642 = vrot.lane.b32.xlu0 %v304_v21, %s2994_s15  ;;  %v3364_v32 = vld [vmem:[#allocation2 + $0x40] sm:$0xff]  ;;  %2583 = vmatpush3.bf16.msra.mxu0 %v2580_v31  ;;  %v2584_v35 = vpack.c.bf16 %v1018_v34, %v1017_v33 }
  0x92   :  { %640 = vrot.lane.b32.xlu1 %v256_v4, %s2994_s15  ;;  %v3397_v42 = vld [vmem:[#allocation2 + $0x60] sm:$0xff]  ;;  %v262_v46 = vld [vmem:[#allocation2 + $0x72] sm:$0xff] }
  0x93   :  { %173 = vst.msk [vmem:[#allocation2 + $0xc1] sm:$0xff] %vm163_vm0, %v155_v12  ;;  %174 = vst.msk [vmem:[#allocation2 + $0xd1] sm:$0xff] %vm163_vm0, %v156_v15  ;;  %2585 = vmatprep.subr.bf16.mxu0 %v2584_v35  ;;  %v245_v43 = vld [vmem:[#allocation2 + $0x61] sm:$0xff] }
  0x94   :  { %v121_v16 = vpop.permute.xlu1 %120  ;;  %v123_v18 = vpop.permute.xlu0 %122  ;;  %v308_v45 = vld [vmem:[#allocation2 + $0x62] sm:$0xff] }
  0x95   :  { %v157_v17 = vmax.f32 %v3252_v38, %v121_v16  ;;  %v158_v19 = vmax.f32 %v3262_v41, %v123_v18  ;;  %454 = vrot.lane.b32.xlu0 %v258_v23, %s2991_s0  ;;  %2587 = vmatpush3.bf16.msra.mxu0 %v2584_v35  ;;  %v244_v38 = vld [vmem:[#allocation2 + $0x51] sm:$0xff]  ;;  %v223_v16 = vld [vmem:[#allocation2] sm:$0xff] }
  0x96   :  { %452 = vrot.lane.b32.xlu1 %v304_v21, %s2991_s0  ;;  %2519 = vmatprep.subr.msk.mxu0 %vm1076_vm4, %v1019_v36  ;;  %v3391_v41 = vld [vmem:[#allocation2 + $0x50] sm:$0xff]  ;;  %v294_v52 = vld [vmem:[#allocation2 + $0x81] sm:$0xff] }
  0x97   :  { %175 = vst.msk [vmem:[#allocation2 + $0xe1] sm:$0xff] %vm163_vm0, %v157_v17  ;;  %176 = vst.msk [vmem:[#allocation2 + $0xf1] sm:$0xff] %vm163_vm0, %v158_v19  ;;  %v248_v51 = vld [vmem:[#allocation2 + $0xb1] sm:$0xff]  ;;  %v310_v54 = vld [vmem:[#allocation2 + $0x82] sm:$0xff] }
  0x98   :  { %v125_v20 = vpop.permute.xlu1 %124  ;;  %v127_v24 = vpop.permute.xlu0 %126  ;;  %v264_v58 = vld [vmem:[#allocation2 + $0xb2] sm:$0xff] }
  0x99   :  { %v159_v22 = vmax.f32 %v3272_v44, %v125_v20  ;;  %v160_v25 = vmax.f32 %v3282_v47, %v127_v24  ;;  %706 = vrot.lane.b32.xlu0 %v3352_v28, %s2995_s20  ;;  %2520 = vmatpush3.msk.msra.mxu0 %vm1076_vm4, %v1019_v36  ;;  %v246_v44 = vld [vmem:[#allocation2 + $0x71] sm:$0xff]  ;;  %vm2256_vm4 = vcmask 588800  }
  0x9a   :  { %704 = vrot.lane.b32.xlu1 %v3324_v8, %s2995_s20  ;;  %v3415_v47 = vld [vmem:[#allocation2 + $0x70] sm:$0xff]  ;;  %v3448_v2 = vld [vmem:[#allocation2 + $0xc0] sm:$0xff] }
  0x9b   :  { %177 = vst.msk [vmem:[#allocation2 + $0x101] sm:$0xff] %vm163_vm0, %v159_v22  ;;  %178 = vst.msk [vmem:[#allocation2 + $0x111] sm:$0xff] %vm163_vm0, %v160_v25  ;;  %v3446_v1 = vld [vmem:[#allocation2 + $0xb0] sm:$0xff]  ;;  %v249_v10 = vld [vmem:[#allocation2 + $0xc1] sm:$0xff] }
  0x9c   :  { %v129_v26 = vpop.permute.xlu1 %128  ;;  %v385_v50 = vpop.permute.xlu0 %384  ;;  %v250_v15 = vld [vmem:[#allocation2 + $0xd1] sm:$0xff]  ;;  %v312_v20 = vld [vmem:[#allocation2 + $0xc2] sm:$0xff] }
  0x9d   :  { %v161_v27 = vmax.f32 %v3286_v48, %v129_v26  ;;  %518 = vrot.lane.b32.xlu0 %v3364_v32, %s2992_s25  ;;  %v278_v48 = vld [vmem:[#allocation2 + $0x80] sm:$0xff]  ;;  %v359_v17 = vld [vmem:[#allocation2 + $0x92] sm:$0xff] }
  0x9e   :  { %516 = vrot.lane.b32.xlu1 %v3352_v28, %s2992_s25  ;;  %v266_v25 = vld [vmem:[#allocation2 + $0xd2] sm:$0xff] }
  0x9f   :  { %179 = vst.msk [vmem:[#allocation2 + $0x121] sm:$0xff] %vm163_vm0, %v161_v27  ;;  %v3484_v31 = vld [vmem:[#allocation2 + $0xd0] sm:$0xff] }
  0xa0   :  { %v449_v53 = vpop.permute.xlu0 %448 }
  0xa1   :  { %770 = vrot.lane.b32.xlu0 %v242_v13, %s2996_s26 }
  0xa2   :  { %768 = vrot.lane.b32.xlu1 %v288_v6, %s2996_s26 }
  0xa5   :  { %392 = vrot.lane.b32.xlu0 %v243_v37, %s2990_s13 }
  0xa6   :  { %580 = vrot.lane.b32.xlu1 %v242_v13, %s2993_s14 }
  0xa9   :  { %644 = vrot.lane.b32.xlu0 %v258_v23, %s2994_s15 }
  0xaa   :  { %832 = vrot.lane.b32.xlu1 %v304_v21, %s2997_s29  ;;  %v880_v21 = vsel %vm163_vm0, %v223_v16, %v385_v50 }
  0xab   :  { %v897_v24 = vsel %vm896_vm3, %v880_v21, %v449_v53 }
  0xad   :  { %394 = vrot.lane.b32.xlu0 %v244_v38, %s2990_s13 }
  0xae   :  { %582 = vrot.lane.b32.xlu1 %v243_v37, %s2993_s14 }
  0xb1   :  { %646 = vrot.lane.b32.xlu0 %v306_v39, %s2994_s15 }
  0xb2   :  { %834 = vrot.lane.b32.xlu1 %v258_v23, %s2997_s29 }
  0xb5   :  { %458 = vrot.lane.b32.xlu0 %v260_v40, %s2991_s0 }
  0xb6   :  { %456 = vrot.lane.b32.xlu1 %v306_v39, %s2991_s0 }
  0xb9   :  { %710 = vrot.lane.b32.xlu0 %v3391_v41, %s2995_s20 }
  0xba   :  { %708 = vrot.lane.b32.xlu1 %v3364_v32, %s2995_s20 }
  0xbd   :  { %522 = vrot.lane.b32.xlu0 %v3397_v42, %s2992_s25 }
  0xbe   :  { %520 = vrot.lane.b32.xlu1 %v3391_v41, %s2992_s25 }
  0xc1   :  { %774 = vrot.lane.b32.xlu0 %v244_v38, %s2996_s26 }
  0xc2   :  { %772 = vrot.lane.b32.xlu1 %v243_v37, %s2996_s26 }
  0xc5   :  { %396 = vrot.lane.b32.xlu0 %v245_v43, %s2990_s13 }
  0xc6   :  { %584 = vrot.lane.b32.xlu1 %v244_v38, %s2993_s14 }
  0xc9   :  { %648 = vrot.lane.b32.xlu0 %v260_v40, %s2994_s15 }
  0xca   :  { %836 = vrot.lane.b32.xlu1 %v306_v39, %s2997_s29 }
  0xcd   :  { %398 = vrot.lane.b32.xlu0 %v246_v44, %s2990_s13 }
  0xce   :  { %586 = vrot.lane.b32.xlu1 %v245_v43, %s2993_s14 }
  0xd1   :  { %650 = vrot.lane.b32.xlu0 %v308_v45, %s2994_s15 }
  0xd2   :  { %838 = vrot.lane.b32.xlu1 %v260_v40, %s2997_s29  ;;  %v3498_v40 = vld [vmem:[#allocation2 + $0xe0] sm:$0xff] }
  0xd5   :  { %462 = vrot.lane.b32.xlu0 %v262_v46, %s2991_s0 }
  0xd6   :  { %460 = vrot.lane.b32.xlu1 %v308_v45, %s2991_s0 }
  0xd9   :  { %714 = vrot.lane.b32.xlu0 %v3415_v47, %s2995_s20 }
  0xda   :  { %712 = vrot.lane.b32.xlu1 %v3397_v42, %s2995_s20 }
  0xdd   :  { %526 = vrot.lane.b32.xlu0 %v278_v48, %s2992_s25 }
  0xde   :  { %524 = vrot.lane.b32.xlu1 %v3415_v47, %s2992_s25 }
  0xe1   :  { %778 = vrot.lane.b32.xlu0 %v246_v44, %s2996_s26 }
  0xe2   :  { %776 = vrot.lane.b32.xlu1 %v245_v43, %s2996_s26 }
  0xe5   :  { %400 = vrot.lane.b32.xlu0 %v247_v49, %s2990_s13 }
  0xe6   :  { %588 = vrot.lane.b32.xlu1 %v246_v44, %s2993_s14 }
  0xe9   :  { %652 = vrot.lane.b32.xlu0 %v262_v46, %s2994_s15 }
  0xea   :  { %840 = vrot.lane.b32.xlu1 %v308_v45, %s2997_s29 }
  0xed   :  { %402 = vrot.lane.b32.xlu0 %v248_v51, %s2990_s13 }
  0xee   :  { %590 = vrot.lane.b32.xlu1 %v294_v52, %s2993_s14 }
  0xf1   :  { %654 = vrot.lane.b32.xlu0 %v310_v54, %s2994_s15 }
  0xf2   :  { %842 = vrot.lane.b32.xlu1 %v262_v46, %s2997_s29 }
  0xf3   :  { %v513_v57 = vpop.permute.xlu0 %512 }
  0xf4   :  { %v3434_v56 = vpop.permute.xlu1 %386  ;;  %v914_v26 = vsel %vm913_vm5, %v897_v24, %v513_v57 }
  0xf5   :  { %466 = vrot.lane.b32.xlu0 %v264_v58, %s2991_s0  ;;  %v881_v35 = vsel %vm163_vm0, %v3311_v62, %v3434_v56 }
  0xf6   :  { %464 = vrot.lane.b32.xlu1 %v263_v55, %s2991_s0 }
  0xf7   :  { %v577_v61 = vpop.permute.xlu0 %576 }
  0xf8   :  { %v3438_v60 = vpop.permute.xlu1 %450  ;;  %v931_v30 = vsel %vm930_vm6, %v914_v26, %v577_v61 }
  0xf9   :  { %718 = vrot.lane.b32.xlu0 %v327_v59, %s2995_s20  ;;  %v898_v39 = vsel %vm896_vm3, %v881_v35, %v3438_v60  ;;  %v252_v59 = vld [vmem:[#allocation2 + $0xf1] sm:$0xff] }
  0xfa   :  { %716 = vrot.lane.b32.xlu1 %v278_v48, %s2995_s20 }
  0xfb   :  { %v3444_v0 = vpop.permute.xlu0 %578 }
  0xfc   :  { %v3442_v63 = vpop.permute.xlu1 %514 }
  0xfd   :  { %530 = vrot.lane.b32.xlu0 %v3448_v2, %s2992_s25  ;;  %v915_v44 = vsel %vm913_vm5, %v898_v39, %v3442_v63  ;;  %v314_v63 = vld [vmem:[#allocation2 + $0xe2] sm:$0xff] }
  0xfe   :  { %528 = vrot.lane.b32.xlu1 %v3446_v1, %s2992_s25  ;;  %v932_v46 = vsel %vm930_vm6, %v915_v44, %v3444_v0 }
  0xff   :  { %v3456_v5 = vpop.permute.xlu0 %390 }
 0x100   :  { %v3454_v4 = vpop.permute.xlu1 %388 }
 0x101   :  { %782 = vrot.lane.b32.xlu0 %v343_v3, %s2996_s26 }
 0x102   :  { %780 = vrot.lane.b32.xlu1 %v294_v52, %s2996_s26 }
 0x103   :  { %v643_v9 = vpop.permute.xlu0 %642 }
 0x104   :  { %v641_v6 = vpop.permute.xlu1 %640  ;;  %v949_v48 = vsel %vm947_vm7, %v932_v46, %v643_v9  ;;  %v882_v9 = vsel %vm163_vm0, %v3324_v8, %v3454_v4  ;;  %v316_v46 = vld [vmem:[#allocation2 + $0x102] sm:$0xff] }
 0x105   :  { %404 = vrot.lane.b32.xlu0 %v249_v10, %s2990_s13  ;;  %v948_v33 = vsel %vm947_vm7, %v931_v30, %v641_v6  ;;  %v268_v6 = vld [vmem:[#allocation2 + $0xf2] sm:$0xff] }
 0x106   :  { %592 = vrot.lane.b32.xlu1 %v248_v51, %s2993_s14 }
 0x107   :  { %v3464_v12 = vpop.permute.xlu0 %454 }
 0x108   :  { %v3462_v11 = vpop.permute.xlu1 %452 }
 0x109   :  { %656 = vrot.lane.b32.xlu0 %v264_v58, %s2994_s15 }
 0x10a   :  { %844 = vrot.lane.b32.xlu1 %v310_v54, %s2997_s29  ;;  %v251_v54 = vld [vmem:[#allocation2 + $0xe1] sm:$0xff] }
 0x10b   :  { %v707_v14 = vpop.permute.xlu0 %706 }
 0x10c   :  { %v705_v13 = vpop.permute.xlu1 %704  ;;  %v966_v49 = vsel %vm964_vm8, %v949_v48, %v707_v14 }
 0x10d   :  { %406 = vrot.lane.b32.xlu0 %v250_v15, %s2990_s13  ;;  %v965_v34 = vsel %vm964_vm8, %v948_v33, %v705_v13 }
 0x10e   :  { %594 = vrot.lane.b32.xlu1 %v249_v10, %s2993_s14 }
 0x10f   :  { %v3472_v19 = vpop.permute.xlu0 %518 }
 0x110   :  { %v3470_v18 = vpop.permute.xlu1 %516 }
 0x111   :  { %658 = vrot.lane.b32.xlu0 %v312_v20, %s2994_s15 }
 0x112   :  { %846 = vrot.lane.b32.xlu1 %v359_v17, %s2997_s29  ;;  %v3547_v17 = vld [vmem:[#allocation2 + $0xf0] sm:$0xff] }
 0x113   :  { %v771_v23 = vpop.permute.xlu0 %770 }
 0x114   :  { %v769_v22 = vpop.permute.xlu1 %768  ;;  %v983_v50 = vsel %vm981_vm9, %v966_v49, %v771_v23  ;;  %v883_v23 = vsel %vm163_vm0, %v3352_v28, %v3456_v5 }
 0x115   :  { %470 = vrot.lane.b32.xlu0 %v266_v25, %s2991_s0  ;;  %v982_v36 = vsel %vm981_vm9, %v965_v34, %v769_v22  ;;  %v3557_v22 = vld [vmem:[#allocation2 + $0x100] sm:$0xff]  ;;  %v900_v24 = vsel %vm896_vm3, %v883_v23, %v3464_v12 }
 0x116   :  { %468 = vrot.lane.b32.xlu1 %v312_v20, %s2991_s0 }
 0x117   :  { %v3481_v29 = vpop.permute.xlu0 %392 }
 0x118   :  { %v581_v27 = vpop.permute.xlu1 %580 }
 0x119   :  { %722 = vrot.lane.b32.xlu0 %v3484_v31, %s2995_s20 }
 0x11a   :  { %720 = vrot.lane.b32.xlu1 %v3448_v2, %s2995_s20 }
 0x11b   :  { %v645_v38 = vpop.permute.xlu0 %644 }
 0x11c   :  { %v833_v37 = vpop.permute.xlu1 %832 }
 0x11d   :  { %v999_v43 = vsel %vm998_vm10, %v982_v36, %v833_v37  ;;  %534 = vrot.lane.b32.xlu0 %v3498_v40, %s2992_s25 }
 0x11e   :  { %532 = vrot.lane.b32.xlu1 %v3484_v31, %s2992_s25  ;;  %2521 = vmatprep.mubr.msk.f32.mxu0 %vm1027_vm11, %v999_v43  ;;  %v254_v43 = vld [vmem:[#allocation2 + $0x111] sm:$0xff] }
 0x11f   :  { %v3508_v45 = vpop.permute.xlu0 %394 }
 0x120   :  { %v583_v62 = vpop.permute.xlu1 %582 }
 0x121   :  { %786 = vrot.lane.b32.xlu0 %v250_v15, %s2996_s26 }
 0x122   :  { %784 = vrot.lane.b32.xlu1 %v249_v10, %s2996_s26  ;;  %v899_v10 = vsel %vm896_vm3, %v882_v9, %v3462_v11 }
 0x123   :  { %v647_v52 = vpop.permute.xlu0 %646  ;;  %v916_v13 = vsel %vm913_vm5, %v899_v10, %v3470_v18 }
 0x124   :  { %v835_v51 = vpop.permute.xlu1 %834  ;;  %v933_v16 = vsel %vm930_vm6, %v916_v13, %v581_v27 }
 0x125   :  { %v1000_v53 = vsel %vm998_vm10, %v983_v50, %v835_v51  ;;  %408 = vrot.lane.b32.xlu0 %v251_v54, %s2990_s13  ;;  %v270_v50 = vld [vmem:[#allocation2 + $0x112] sm:$0xff]  ;;  %v884_v51 = vsel %vm163_vm0, %v3364_v32, %v3481_v29 }
 0x126   :  { %596 = vrot.lane.b32.xlu1 %v250_v15, %s2993_s14  ;;  %2522 = vmatmul.mubr.msk.f32.vlgmr.msra.gmra.mrb[0].mxu0 %vm1027_vm11, %v1000_v53 }
 0x127   :  { %v3523_v56 = vpop.permute.xlu0 %458 }
 0x128   :  { %v3521_v55 = vpop.permute.xlu1 %456 }
 0x129   :  { %660 = vrot.lane.b32.xlu0 %v266_v25, %s2994_s15 }
 0x12a   :  { %848 = vrot.lane.b32.xlu1 %v312_v20, %s2997_s29  ;;  %v950_v20 = vsel %vm947_vm7, %v933_v16, %v645_v38 }
 0x12b   :  { %v711_v58 = vpop.permute.xlu0 %710 }
 0x12c   :  { %v709_v57 = vpop.permute.xlu1 %708 }
 0x12d   :  { %410 = vrot.lane.b32.xlu0 %v252_v59, %s2990_s13  ;;  %v967_v8 = vsel %vm964_vm8, %v950_v20, %v709_v57 }
 0x12e   :  { %598 = vrot.lane.b32.xlu1 %v251_v54, %s2993_s14 }
 0x12f   :  { %v3531_v61 = vpop.permute.xlu0 %522 }
 0x130   :  { %v3529_v60 = vpop.permute.xlu1 %520 }
 0x131   :  { %662 = vrot.lane.b32.xlu0 %v314_v63, %s2994_s15 }
 0x132   :  { %850 = vrot.lane.b32.xlu1 %v266_v25, %s2997_s29  ;;  %v917_v25 = vsel %vm913_vm5, %v900_v24, %v3472_v19  ;;  %v253_v19 = vld [vmem:[#allocation2 + $0x101] sm:$0xff] }
 0x133   :  { %v775_v3 = vpop.permute.xlu0 %774  ;;  %v934_v30 = vsel %vm930_vm6, %v917_v25, %v583_v62 }
 0x134   :  { %v773_v0 = vpop.permute.xlu1 %772  ;;  %v951_v28 = vsel %vm947_vm7, %v934_v30, %v647_v52  ;;  %v901_v52 = vsel %vm896_vm3, %v884_v51, %v3521_v55  ;;  %v335_v30 = vld [vmem:[#allocation2 + $0x130] sm:$0xff] }
 0x135   :  { %474 = vrot.lane.b32.xlu0 %v268_v6, %s2991_s0  ;;  %v984_v4 = vsel %vm981_vm9, %v967_v8, %v773_v0  ;;  %v968_v5 = vsel %vm964_vm8, %v951_v28, %v711_v58  ;;  %v918_v53 = vsel %vm913_vm5, %v901_v52, %v3529_v60 }
 0x136   :  { %472 = vrot.lane.b32.xlu1 %v314_v63, %s2991_s0  ;;  %v985_v12 = vsel %vm981_vm9, %v968_v5, %v775_v3  ;;  %v286_v3 = vld [vmem:[#allocation2 + $0x120] sm:$0xff] }
 0x137   :  { %v3544_v15 = vpop.permute.xlu0 %396 }
 0x138   :  { %v585_v14 = vpop.permute.xlu1 %584 }
 0x139   :  { %726 = vrot.lane.b32.xlu0 %v3547_v17, %s2995_s20  ;;  %v935_v58 = vsel %vm930_vm6, %v918_v53, %v585_v14 }
 0x13a   :  { %724 = vrot.lane.b32.xlu1 %v3498_v40, %s2995_s20 }
 0x13b   :  { %v649_v18 = vpop.permute.xlu0 %648 }
 0x13c   :  { %v837_v11 = vpop.permute.xlu1 %836 }
 0x13d   :  { %v1001_v21 = vsel %vm998_vm10, %v984_v4, %v837_v11  ;;  %538 = vrot.lane.b32.xlu0 %v3557_v22, %s2992_s25 }
 0x13e   :  { %536 = vrot.lane.b32.xlu1 %v3547_v17, %s2992_s25  ;;  %2524 = vmatprep.mubr.msk.f32.mxu0 %vm1027_vm11, %v1001_v21 }
 0x13f   :  { %v3571_v27 = vpop.permute.xlu0 %398 }
 0x140   :  { %v587_v26 = vpop.permute.xlu1 %586 }
 0x141   :  { %790 = vrot.lane.b32.xlu0 %v252_v59, %s2996_s26 }
 0x142   :  { %788 = vrot.lane.b32.xlu1 %v251_v54, %s2996_s26 }
 0x143   :  { %v651_v34 = vpop.permute.xlu0 %650 }
 0x144   :  { %v839_v33 = vpop.permute.xlu1 %838 }
 0x145   :  { %v1002_v35 = vsel %vm998_vm10, %v985_v12, %v839_v33  ;;  %412 = vrot.lane.b32.xlu0 %v253_v19, %s2990_s13  ;;  %v886_v12 = vsel %vm163_vm0, %v3397_v42, %v3544_v15  ;;  %v367_v15 = vld [vmem:[#allocation2 + $0x132] sm:$0xff] }
 0x146   :  { %600 = vrot.lane.b32.xlu1 %v252_v59, %s2993_s14  ;;  %2525 = vmatmul.mubr.msk.f32.gmra.mrb[2].mxu0 %vm1027_vm11, %v1002_v35  ;;  %v3609_v59 = vld [vmem:[#allocation2 + $0x110] sm:$0xff] }
 0x147   :  { %v3585_v37 = vpop.permute.xlu0 %462 }
 0x148   :  { %v3583_v36 = vpop.permute.xlu1 %460 }
 0x149   :  { %664 = vrot.lane.b32.xlu0 %v268_v6, %s2994_s15  ;;  %v903_v33 = vsel %vm896_vm3, %v886_v12, %v3583_v36 }
 0x14a   :  { %852 = vrot.lane.b32.xlu1 %v314_v63, %s2997_s29  ;;  %v952_v63 = vsel %vm947_vm7, %v935_v58, %v649_v18 }
 0x14b   :  { %v715_v39 = vpop.permute.xlu0 %714 }
 0x14c   :  { %v713_v38 = vpop.permute.xlu1 %712 }
 0x14d   :  { %414 = vrot.lane.b32.xlu0 %v254_v43, %s2990_s13  ;;  %v969_v32 = vsel %vm964_vm8, %v952_v63, %v713_v38  ;;  %s3001_s13 = smov 64  }
 0x14e   :  { %602 = vrot.lane.b32.xlu1 %v253_v19, %s2993_s14 }
 0x14f   :  { %v3593_v62 = vpop.permute.xlu0 %526 }
 0x150   :  { %v3591_v44 = vpop.permute.xlu1 %524 }
 0x151   :  { %666 = vrot.lane.b32.xlu0 %v316_v46, %s2994_s15  ;;  %v920_v35 = vsel %vm913_vm5, %v903_v33, %v3591_v44  ;;  %v887_v44 = vsel %vm163_vm0, %v3415_v47, %v3571_v27 }
 0x152   :  { %854 = vrot.lane.b32.xlu1 %v268_v6, %s2997_s29  ;;  %v885_v6 = vsel %vm163_vm0, %v3391_v41, %v3508_v45 }
 0x153   :  { %v779_v49 = vpop.permute.xlu0 %778  ;;  %v902_v9 = vsel %vm896_vm3, %v885_v6, %v3523_v56  ;;  %v231_v6 = vld [vmem:[#allocation2 + $0xa0] sm:$0xff] }
 0x154   :  { %v777_v48 = vpop.permute.xlu1 %776  ;;  %v919_v10 = vsel %vm913_vm5, %v902_v9, %v3531_v61  ;;  %v302_v61 = vld [vmem:[#allocation2 + $0x121] sm:$0xff] }
 0x155   :  { %478 = vrot.lane.b32.xlu0 %v270_v50, %s2991_s0  ;;  %v986_v29 = vsel %vm981_vm9, %v969_v32, %v777_v48  ;;  %v936_v16 = vsel %vm930_vm6, %v919_v10, %v587_v26  ;;  %v318_v26 = vld [vmem:[#allocation2 + $0x122] sm:$0xff] }
 0x156   :  { %476 = vrot.lane.b32.xlu1 %v316_v46, %s2991_s0  ;;  %v953_v41 = vsel %vm947_vm7, %v936_v16, %v651_v34  ;;  %v351_v34 = vld [vmem:[#allocation2 + $0x131] sm:$0xff] }
 0x157   :  { %v3606_v57 = vpop.permute.xlu0 %400  ;;  %v970_v45 = vsel %vm964_vm8, %v953_v41, %v715_v39 }
 0x158   :  { %v589_v54 = vpop.permute.xlu1 %588  ;;  %v987_v56 = vsel %vm981_vm9, %v970_v45, %v779_v49 }
 0x159   :  { %730 = vrot.lane.b32.xlu0 %v3609_v59, %s2995_s20  ;;  %v937_v39 = vsel %vm930_vm6, %v920_v35, %v589_v54 }
 0x15a   :  { %728 = vrot.lane.b32.xlu1 %v3557_v22, %s2995_s20 }
 0x15b   :  { %v653_v60 = vpop.permute.xlu0 %652 }
 0x15c   :  { %v841_v55 = vpop.permute.xlu1 %840 }
 0x15d   :  { %v1003_v0 = vsel %vm998_vm10, %v986_v29, %v841_v55  ;;  %542 = vrot.lane.b32.xlu0 %v286_v3, %s2992_s25 }
 0x15e   :  { %540 = vrot.lane.b32.xlu1 %v3609_v59, %s2992_s25  ;;  %2527 = vmatprep.mubr.msk.f32.mxu0 %vm1027_vm11, %v1003_v0  ;;  %s3002_s25 = smov 56  }
 0x15f   :  { %v3630_v14 = vpop.permute.xlu0 %402 }
 0x160   :  { %v591_v13 = vpop.permute.xlu1 %590 }
 0x161   :  { %794 = vrot.lane.b32.xlu0 %v254_v43, %s2996_s26 }
 0x162   :  { %792 = vrot.lane.b32.xlu1 %v253_v19, %s2996_s26 }
 0x163   :  { %v655_v8 = vpop.permute.xlu0 %654 }
 0x164   :  { %v843_v20 = vpop.permute.xlu1 %842 }
 0x165   :  { %v1004_v4 = vsel %vm998_vm10, %v987_v56, %v843_v20  ;;  %606 = vrot.lane.b32.xlu0 %v302_v61, %s2993_s14 }
 0x166   :  { %604 = vrot.lane.b32.xlu1 %v254_v43, %s2993_s14  ;;  %2528 = vmatmul.mubr.msk.f32.gmra.mrb[4].mxu0 %vm1027_vm11, %v1004_v4  ;;  %v954_v43 = vsel %vm947_vm7, %v937_v39, %v653_v60 }
 0x167   :  { %v3642_v18 = vpop.permute.xlu0 %466 }
 0x168   :  { %v465_v11 = vpop.permute.xlu1 %464 }
 0x169   :  { %858 = vrot.lane.b32.xlu0 %v270_v50, %s2997_s29 }
 0x16a   :  { %856 = vrot.lane.b32.xlu1 %v316_v46, %s2997_s29 }
 0x16b   :  { %v719_v23 = vpop.permute.xlu0 %718 }
 0x16c   :  { %v717_v21 = vpop.permute.xlu1 %716 }
 0x16d   :  { %732 = vrot.lane.b32.xlu0 %v286_v3, %s2995_s20  ;;  %v971_v42 = vsel %vm964_vm8, %v954_v43, %v717_v21 }
 0x16e   :  { %668 = vrot.lane.b32.xlu1 %v270_v50, %s2994_s15  ;;  %v904_v50 = vsel %vm896_vm3, %v887_v44, %v3585_v37 }
 0x16f   :  { %v3648_v25 = vpop.permute.xlu0 %530  ;;  %v921_v51 = vsel %vm913_vm5, %v904_v50, %v3593_v62 }
 0x170   :  { %v529_v24 = vpop.permute.xlu1 %528  ;;  %v938_v54 = vsel %vm930_vm6, %v921_v51, %v591_v13  ;;  %v888_v13 = vsel %vm163_vm0, %v231_v6, %v3606_v57  ;;  %v889_v57 = vsel %vm163_vm0, %v3446_v1, %v3630_v14 }
 0x171   :  { %796 = vrot.lane.b32.xlu0 %v302_v61, %s2996_s26  ;;  %v955_v58 = vsel %vm947_vm7, %v938_v54, %v655_v8  ;;  %v905_v16 = vsel %vm896_vm3, %v888_v13, %v465_v11  ;;  %v906_v11 = vsel %vm896_vm3, %v889_v57, %v3642_v18 }
 0x172   :  { %670 = vrot.lane.b32.xlu1 %v318_v26, %s2994_s15  ;;  %v972_v63 = vsel %vm964_vm8, %v955_v58, %v719_v23  ;;  %v922_v41 = vsel %vm913_vm5, %v905_v16, %v529_v24  ;;  %v923_v24 = vsel %vm913_vm5, %v906_v11, %v3648_v25 }
 0x173   :  { %v783_v5 = vpop.permute.xlu0 %782 }
 0x174   :  { %v781_v28 = vpop.permute.xlu1 %780  ;;  %v989_v47 = vsel %vm981_vm9, %v972_v63, %v783_v5 }
 0x175   :  { %860 = vrot.lane.b32.xlu0 %v318_v26, %s2997_s29  ;;  %v988_v46 = vsel %vm981_vm9, %v971_v42, %v781_v28 }
 0x176   :  { %734 = vrot.lane.b32.xlu1 %v335_v30, %s2995_s20 }
 0x177   :  { %v3661_v38 = vpop.permute.xlu0 %404 }
 0x178   :  { %v593_v19 = vpop.permute.xlu1 %592 }
 0x179   :  { %v939_v20 = vsel %vm930_vm6, %v922_v41, %v593_v19 }
 0x17a   :  { %798 = vrot.lane.b32.xlu1 %v351_v34, %s2996_s26 }
 0x17b   :  { %v657_v36 = vpop.permute.xlu0 %656 }
 0x17c   :  { %v845_v48 = vpop.permute.xlu1 %844  ;;  %v956_v8 = vsel %vm947_vm7, %v939_v20, %v657_v36 }
 0x17d   :  { %v1005_v49 = vsel %vm998_vm10, %v988_v46, %v845_v48  ;;  %v890_v48 = vsel %vm163_vm0, %v3448_v2, %v3661_v38 }
 0x17e   :  { %862 = vrot.lane.b32.xlu1 %v367_v15, %s2997_s29  ;;  %2530 = vmatprep.mubr.msk.f32.mxu0 %vm1027_vm11, %v1005_v49 }
 0x17f   :  { %v3678_v53 = vpop.permute.xlu0 %406 }
 0x180   :  { %v595_v52 = vpop.permute.xlu1 %594  ;;  %v891_v2 = vsel %vm163_vm0, %v3484_v31, %v3678_v53 }
 0x181   :  { %v940_v5 = vsel %vm930_vm6, %v923_v24, %v595_v52 }
 0x183   :  { %v659_v32 = vpop.permute.xlu0 %658 }
 0x184   :  { %v847_v27 = vpop.permute.xlu1 %846  ;;  %v957_v12 = vsel %vm947_vm7, %v940_v5, %v659_v32 }
 0x185   :  { %v1006_v29 = vsel %vm998_vm10, %v989_v47, %v847_v27 }
 0x186   :  { %2531 = vmatmul.mubr.msk.f32.gmra.mrb[6].mxu0 %vm1027_vm11, %v1006_v29 }
 0x187   :  { %v471_v55 = vpop.permute.xlu0 %470 }
 0x188   :  { %v469_v37 = vpop.permute.xlu1 %468  ;;  %v908_v38 = vsel %vm896_vm3, %v891_v2, %v471_v55 }
 0x189   :  { %v907_v36 = vsel %vm896_vm3, %v890_v48, %v469_v37 }
 0x18b   :  { %v723_v60 = vpop.permute.xlu0 %722 }
 0x18c   :  { %v721_v62 = vpop.permute.xlu1 %720  ;;  %v974_v33 = vsel %vm964_vm8, %v957_v12, %v723_v60 }
 0x18d   :  { %v973_v4 = vsel %vm964_vm8, %v956_v8, %v721_v62 }
 0x18f   :  { %v535_v3 = vpop.permute.xlu0 %534 }
 0x190   :  { %v533_v0 = vpop.permute.xlu1 %532  ;;  %v925_v32 = vsel %vm913_vm5, %v908_v38, %v535_v3 }
 0x191   :  { %v924_v49 = vsel %vm913_vm5, %v907_v36, %v533_v0 }
 0x193   :  { %v787_v10 = vpop.permute.xlu0 %786 }
 0x194   :  { %v785_v9 = vpop.permute.xlu1 %784  ;;  %v991_v34 = vsel %vm981_vm9, %v974_v33, %v787_v10 }
 0x195   :  { %v990_v61 = vsel %vm981_vm9, %v973_v4, %v785_v9 }
 0x197   :  { %v3690_v56 = vpop.permute.xlu0 %408 }
 0x198   :  { %v597_v45 = vpop.permute.xlu1 %596  ;;  %v892_v8 = vsel %vm163_vm0, %v3498_v40, %v3690_v56 }
 0x199   :  { %v941_v51 = vsel %vm930_vm6, %v924_v49, %v597_v45 }
 0x19b   :  { %v661_v23 = vpop.permute.xlu0 %660 }
 0x19c   :  { %v849_v21 = vpop.permute.xlu1 %848  ;;  %v958_v52 = vsel %vm947_vm7, %v941_v51, %v661_v23 }
 0x19d   :  { %v1007_v26 = vsel %vm998_vm10, %v990_v61, %v849_v21 }
 0x19e   :  { %2533 = vmatprep.mubr.msk.f32.mxu0 %vm1027_vm11, %v1007_v26 }
 0x19f   :  { %v411_v28 = vpop.permute.xlu0 %410 }
 0x1a0   :  { %v599_v30 = vpop.permute.xlu1 %598  ;;  %v893_v4 = vsel %vm163_vm0, %v3547_v17, %v411_v28 }
 0x1a1   :  { %v942_v62 = vsel %vm930_vm6, %v925_v32, %v599_v30 }
 0x1a3   :  { %v663_v1 = vpop.permute.xlu0 %662 }
 0x1a4   :  { %v851_v35 = vpop.permute.xlu1 %850  ;;  %v959_v60 = vsel %vm947_vm7, %v942_v62, %v663_v1 }
 0x1a5   :  { %v1008_v14 = vsel %vm998_vm10, %v991_v34, %v851_v35 }
 0x1a6   :  { %2534 = vmatmul.mubr.msk.f32.gmra.mrb[8].mxu0 %vm1027_vm11, %v1008_v14 }
 0x1a7   :  { %v475_v19 = vpop.permute.xlu0 %474 }
 0x1a8   :  { %v473_v18 = vpop.permute.xlu1 %472  ;;  %v910_v21 = vsel %vm896_vm3, %v893_v4, %v475_v19 }
 0x1a9   :  { %v909_v61 = vsel %vm896_vm3, %v892_v8, %v473_v18 }
 0x1ab   :  { %v727_v25 = vpop.permute.xlu0 %726 }
 0x1ac   :  { %v725_v39 = vpop.permute.xlu1 %724  ;;  %v976_v0 = vsel %vm964_vm8, %v959_v60, %v727_v25 }
 0x1ad   :  { %v975_v54 = vsel %vm964_vm8, %v958_v52, %v725_v39 }
 0x1af   :  { %v539_v42 = vpop.permute.xlu0 %538 }
 0x1b0   :  { %v537_v43 = vpop.permute.xlu1 %536  ;;  %v927_v26 = vsel %vm913_vm5, %v910_v21, %v539_v42 }
 0x1b1   :  { %v926_v23 = vsel %vm913_vm5, %v909_v61, %v537_v43 }
 0x1b3   :  { %v791_v46 = vpop.permute.xlu0 %790 }
 0x1b4   :  { %v789_v15 = vpop.permute.xlu1 %788  ;;  %v993_v6 = vsel %vm981_vm9, %v976_v0, %v791_v46 }
 0x1b5   :  { %v992_v58 = vsel %vm981_vm9, %v975_v54, %v789_v15 }
 0x1b7   :  { %v413_v50 = vpop.permute.xlu0 %412 }
 0x1b8   :  { %v601_v44 = vpop.permute.xlu1 %600  ;;  %v894_v14 = vsel %vm163_vm0, %v3557_v22, %v413_v50 }
 0x1b9   :  { %v943_v24 = vsel %vm930_vm6, %v926_v23, %v601_v44 }
 0x1bb   :  { %v665_v47 = vpop.permute.xlu0 %664 }
 0x1bc   :  { %v853_v63 = vpop.permute.xlu1 %852  ;;  %v960_v5 = vsel %vm947_vm7, %v943_v24, %v665_v47 }
 0x1bd   :  { %v1009_v27 = vsel %vm998_vm10, %v992_v58, %v853_v63 }
 0x1be   :  { %2536 = vmatprep.mubr.msk.f32.mxu0 %vm1027_vm11, %v1009_v27 }
 0x1bf   :  { %v415_v37 = vpop.permute.xlu0 %414 }
 0x1c0   :  { %v603_v29 = vpop.permute.xlu1 %602  ;;  %v895_v50 = vsel %vm163_vm0, %v3609_v59, %v415_v37  ;;  %vm2198_vm0 = vcmask 392192  }
 0x1c1   :  { %v944_v30 = vsel %vm930_vm6, %v927_v26, %v603_v29 }
 0x1c3   :  { %v667_v10 = vpop.permute.xlu0 %666 }
 0x1c4   :  { %v855_v9 = vpop.permute.xlu1 %854  ;;  %v961_v40 = vsel %vm947_vm7, %v944_v30, %v667_v10 }
 0x1c5   :  { %v1010_v31 = vsel %vm998_vm10, %v993_v6, %v855_v9 }
 0x1c6   :  { %2537 = vmatmul.mubr.msk.f32.gmra.mrb[10].mxu0 %vm1027_vm11, %v1010_v31 }
 0x1c7   :  { %v479_v55 = vpop.permute.xlu0 %478 }
 0x1c8   :  { %v477_v53 = vpop.permute.xlu1 %476  ;;  %v912_v51 = vsel %vm896_vm3, %v895_v50, %v479_v55 }
 0x1c9   :  { %v911_v39 = vsel %vm896_vm3, %v894_v14, %v477_v53  ;;  %v3783_v53 = vld [vmem:[%s4346_s2] ss:$0 sm:$0xff] }
 0x1cb   :  { %v731_v3 = vpop.permute.xlu0 %730 }
 0x1cc   :  { %v729_v13 = vpop.permute.xlu1 %728  ;;  %v978_v56 = vsel %vm964_vm8, %v961_v40, %v731_v3 }
 0x1cd   :  { %v977_v17 = vsel %vm964_vm8, %v960_v5, %v729_v13 }
 0x1cf   :  { %v543_v41 = vpop.permute.xlu0 %542 }
 0x1d0   :  { %v541_v16 = vpop.permute.xlu1 %540  ;;  %v929_v52 = vsel %vm913_vm5, %v912_v51, %v543_v41 }
 0x1d1   :  { %v928_v25 = vsel %vm913_vm5, %v911_v39, %v541_v16  ;;  %vm4170_vm5 = vmpackc.low %vm2256_vm4, %vm2256_vm4 }
 0x1d3   :  { %v795_v20 = vpop.permute.xlu0 %794 }
 0x1d4   :  { %v793_v45 = vpop.permute.xlu1 %792  ;;  %v995_v12 = vsel %vm981_vm9, %v978_v56, %v795_v20 }
 0x1d5   :  { %v994_v28 = vsel %vm981_vm9, %v977_v17, %v793_v45 }
 0x1d7   :  { %v607_v11 = vpop.permute.xlu0 %606 }
 0x1d8   :  { %v605_v57 = vpop.permute.xlu1 %604  ;;  %v946_v58 = vsel %vm930_vm6, %v929_v52, %v607_v11 }
 0x1d9   :  { %v945_v43 = vsel %vm930_vm6, %v928_v25, %v605_v57 }
 0x1db   :  { %v859_v34 = vpop.permute.xlu0 %858 }
 0x1dc   :  { %v857_v33 = vpop.permute.xlu1 %856  ;;  %v1012_v1 = vsel %vm998_vm10, %v995_v12, %v859_v34 }
 0x1dd   :  { %v1011_v35 = vsel %vm998_vm10, %v994_v28, %v857_v33 }
 0x1de   :  { %2539 = vmatprep.mubr.msk.f32.mxu0 %vm1027_vm11, %v1011_v35 }
 0x1df   :  { %2540 = vmatmul.mubr.msk.f32.gmra.mrb[12].mxu0 %vm1027_vm11, %v1012_v1  ;;  %v733_v19 = vpop.permute.xlu0 %732 }
 0x1e0   :  { %v669_v18 = vpop.permute.xlu1 %668 }
 0x1e1   :  { %v962_v42 = vsel %vm947_vm7, %v945_v43, %v669_v18 }
 0x1e2   :  { %v979_v48 = vsel %vm964_vm8, %v962_v42, %v733_v19 }
 0x1e3   :  { %v797_v46 = vpop.permute.xlu0 %796 }
 0x1e4   :  { %v671_v15 = vpop.permute.xlu1 %670  ;;  %v996_v36 = vsel %vm981_vm9, %v979_v48, %v797_v46 }
 0x1e5   :  { %v963_v63 = vsel %vm947_vm7, %v946_v58, %v671_v15 }
 0x1e7   :  { %v861_v44 = vpop.permute.xlu0 %860 }
 0x1e8   :  { %v735_v49 = vpop.permute.xlu1 %734  ;;  %v1013_v22 = vsel %vm998_vm10, %v996_v36, %v861_v44 }
 0x1e9   :  { %2542 = vmatprep.mubr.msk.f32.mxu0 %vm1027_vm11, %v1013_v22  ;;  %v980_v47 = vsel %vm964_vm8, %v963_v63, %v735_v49 }
 0x1ec   :  { %v799_v54 = vpop.permute.xlu1 %798 }
 0x1ed   :  { %v997_v27 = vsel %vm981_vm9, %v980_v47, %v799_v54 }
 0x1f0   :  { %v863_v2 = vpop.permute.xlu1 %862 }
 0x1f1   :  { %v1014_v38 = vsel %vm998_vm10, %v997_v27, %v863_v2 }
 0x1f2   :  { %2543 = vmatmul.mubr.msk.f32.gmra.mrb[14].mxu0 %vm1027_vm11, %v1014_v38 }
 0x1f9   :  { %v2523_v59 = vpop.f32.mrb[0].mxu0 }
 0x1fa   :  { %v1146_v32 = vpop.f32.mrb[1].mxu0  ;;  %v3788_v13 = vadd.f32 %v2523_v59, %v3783_v53 }
 0x1fb   :  { %v3791_v3 = vadd.f32 %v3783_v53, %v1146_v32 }
 0x1fc   :  { %v1226_v41 = vsel %vm896_vm3, %v3788_v13, 0.0 }
 0x1fd   :  { %v1225_v45 = vsel %vm896_vm3, %v3791_v3, 0.0 }
 0x1fe   :  { %v1227_v8 = vadd.f32 %v1226_v41, %v1225_v45 }
 0x219   :  { %v2526_v29 = vpop.f32.mrb[2].mxu0 }
 0x21a   :  { %v1156_v37 = vpop.f32.mrb[3].mxu0  ;;  %v3803_v4 = vadd.f32 %v2526_v29, %v3783_v53 }
 0x21b   :  { %v3794_v16 = vadd.f32 %v3783_v53, %v1156_v37 }
 0x21c   :  { %v1230_v23 = vsel %vm896_vm3, %v3803_v4, 0.0 }
 0x21d   :  { %v1228_v20 = vsel %vm896_vm3, %v3794_v16, 0.0 }
 0x21e   :  { %v1229_v21 = vadd.f32 %v1228_v20, %v1227_v8 }
 0x220   :  { %v1231_v57 = vadd.f32 %v1230_v23, %v1229_v21 }
 0x239   :  { %v2529_v62 = vpop.f32.mrb[4].mxu0 }
 0x23a   :  { %v1166_v60 = vpop.f32.mrb[5].mxu0  ;;  %v3813_v11 = vadd.f32 %v2529_v62, %v3783_v53 }
 0x23b   :  { %v3806_v61 = vadd.f32 %v3783_v53, %v1166_v60 }
 0x23c   :  { %v1234_v5 = vsel %vm896_vm3, %v3813_v11, 0.0 }
 0x23d   :  { %v1232_v26 = vsel %vm896_vm3, %v3806_v61, 0.0 }
 0x23e   :  { %v1233_v30 = vadd.f32 %v1232_v26, %v1231_v57 }
 0x240   :  { %v1235_v17 = vadd.f32 %v1234_v5, %v1233_v30 }
 0x259   :  { %v3774_v0 = vpop.f32.mrb[6].mxu0 }
 0x25a   :  { %v1176_v6 = vpop.f32.mrb[7].mxu0  ;;  %v3892_v56 = vadd.f32 %v3774_v0, %v3783_v53 }
 0x25b   :  { %v3816_v24 = vadd.f32 %v3783_v53, %v1176_v6 }
 0x25c   :  { %v1238_v35 = vsel %vm896_vm3, %v3892_v56, 0.0 }
 0x25d   :  { %v1236_v40 = vsel %vm896_vm3, %v3816_v24, 0.0 }
 0x25e   :  { %v1237_v12 = vadd.f32 %v1236_v40, %v1235_v17 }
 0x260   :  { %v1239_v14 = vadd.f32 %v1238_v35, %v1237_v12 }
 0x279   :  { %v3776_v9 = vpop.f32.mrb[8].mxu0 }
 0x27a   :  { %v1186_v10 = vpop.f32.mrb[9].mxu0  ;;  %v3903_v18 = vadd.f32 %v3776_v9, %v3783_v53 }
 0x27b   :  { %v3895_v28 = vadd.f32 %v3783_v53, %v1186_v10 }
 0x27c   :  { %v1242_v25 = vsel %vm896_vm3, %v3903_v18, 0.0 }
 0x27d   :  { %v1240_v1 = vsel %vm896_vm3, %v3895_v28, 0.0 }
 0x27e   :  { %v1241_v39 = vadd.f32 %v1240_v1, %v1239_v14 }
 0x280   :  { %v1243_v42 = vadd.f32 %v1242_v25, %v1241_v39 }
 0x299   :  { %v3778_v31 = vpop.f32.mrb[10].mxu0 }
 0x29a   :  { %v3785_v55 = vpop.f32.mrb[11].mxu0  ;;  %v3915_v15 = vadd.f32 %v3778_v31, %v3783_v53 }
 0x29b   :  { %v3907_v19 = vadd.f32 %v3783_v53, %v3785_v55 }
 0x29c   :  { %v1246_v36 = vsel %vm896_vm3, %v3915_v15, 0.0 }
 0x29d   :  { %v1244_v43 = vsel %vm896_vm3, %v3907_v19, 0.0 }
 0x29e   :  { %v1245_v48 = vadd.f32 %v1244_v43, %v1243_v42 }
 0x2a0   :  { %v1247_v44 = vadd.f32 %v1246_v36, %v1245_v48 }
 0x2b2   :  { %v2541_v33 = vpop.f32.mrb[12].mxu0 }
 0x2b3   :  { %v1206_v34 = vpop.f32.mrb[13].mxu0  ;;  %v3925_v22 = vadd.f32 %v2541_v33, %v3783_v53 }
 0x2b4   :  { %v3918_v46 = vadd.f32 %v3783_v53, %v1206_v34 }
 0x2b5   :  { %v1250_v54 = vsel %vm896_vm3, %v3925_v22, 0.0 }
 0x2b6   :  { %v1248_v49 = vsel %vm896_vm3, %v3918_v46, 0.0 }
 0x2b7   :  { %v1249_v50 = vadd.f32 %v1248_v49, %v1247_v44 }
 0x2b9   :  { %v1251_v47 = vadd.f32 %v1250_v54, %v1249_v50 }
 0x2c5   :  { %v2544_v51 = vpop.f32.mrb[14].mxu0 }
 0x2c6   :  { %v1216_v52 = vpop.f32.mrb[15].mxu0  ;;  %v3930_v58 = vadd.f32 %v2544_v51, %v3783_v53 }
 0x2c7   :  { %v3933_v63 = vadd.f32 %v3783_v53, %v1216_v52 }
 0x2c8   :  { %v1254_v38 = vsel %vm896_vm3, %v3930_v58, 0.0 }
 0x2c9   :  { %v1252_v27 = vsel %vm896_vm3, %v3933_v63, 0.0 }
 0x2ca   :  { %v1253_v2 = vadd.f32 %v1252_v27, %v1251_v47 }
 0x2cc   :  { %v1255_v59 = vadd.f32 %v1254_v38, %v1253_v2 }
 0x2ce   :  { %v1256_v32 = vrot.slane %v1255_v59, 4 }
 0x2d0   :  { %v1257_v29 = vadd.f32 %v1256_v32, %v1255_v59 }
 0x2d2   :  { %v1258_v37 = vrot.slane %v1257_v29, 2 }
 0x2d4   :  { %v1259_v62 = vadd.f32 %v1258_v37, %v1257_v29 }
 0x2d6   :  { %v1260_v60 = vrot.slane %v1259_v62, 1 }
 0x2d8   :  { %v1261_v0 = vadd.f32 %v1260_v60, %v1259_v62 }
 0x2da   :  { %v3939_v6 = vmul.f32 0.0078125, %v1261_v0 }
 0x2dc   :  { %v1263_v9 = vsub.f32 %v3791_v3, %v3939_v6  ;;  %v1264_v10 = vsub.f32 %v3788_v13, %v3939_v6  ;;  %v1265_v31 = vsub.f32 %v3794_v16, %v3939_v6  ;;  %v1266_v53 = vsub.f32 %v3803_v4, %v3939_v6 }
 0x2dd   :  { %v1267_v45 = vsub.f32 %v3806_v61, %v3939_v6  ;;  %v1268_v8 = vsub.f32 %v3813_v11, %v3939_v6  ;;  %v1269_v30 = vsub.f32 %v3816_v24, %v3939_v6  ;;  %v1270_v12 = vsub.f32 %v3892_v56, %v3939_v6 }
 0x2de   :  { %v1279_v55 = vmul.f32 %v1263_v9, %v1263_v9  ;;  %v1280_v41 = vmul.f32 %v1264_v10, %v1264_v10  ;;  %v1281_v20 = vmul.f32 %v1265_v31, %v1265_v31  ;;  %v1282_v21 = vmul.f32 %v1266_v53, %v1266_v53 }
 0x2df   :  { %v1283_v5 = vmul.f32 %v1267_v45, %v1267_v45  ;;  %v1284_v33 = vmul.f32 %v1268_v8, %v1268_v8  ;;  %v1271_v1 = vsub.f32 %v3895_v28, %v3939_v6  ;;  %v1285_v14 = vmul.f32 %v1269_v30, %v1269_v30 }
 0x2e0   :  { %v1295_v23 = vsel %vm896_vm3, %v1279_v55, 0.0  ;;  %v1296_v26 = vsel %vm896_vm3, %v1280_v41, 0.0  ;;  %v1298_v40 = vsel %vm896_vm3, %v1281_v20, 0.0  ;;  %v1300_v34 = vsel %vm896_vm3, %v1282_v21, 0.0 }
 0x2e1   :  { %v1297_v57 = vadd.f32 %v1296_v26, %v1295_v23  ;;  %v1302_v39 = vsel %vm896_vm3, %v1283_v5, 0.0  ;;  %v1272_v43 = vsub.f32 %v3903_v18, %v3939_v6  ;;  %v1286_v42 = vmul.f32 %v1270_v12, %v1270_v12 }
 0x2e2   :  { %v1304_v48 = vsel %vm896_vm3, %v1284_v33, 0.0  ;;  %v1273_v49 = vsub.f32 %v3907_v19, %v3939_v6  ;;  %v1287_v44 = vmul.f32 %v1271_v1, %v1271_v1  ;;  %v1306_v50 = vsel %vm896_vm3, %v1285_v14, 0.0 }
 0x2e3   :  { %v1299_v17 = vadd.f32 %v1298_v40, %v1297_v57  ;;  %v1274_v52 = vsub.f32 %v3915_v15, %v3939_v6  ;;  %v1288_v54 = vmul.f32 %v1272_v43, %v1272_v43  ;;  %v1308_v47 = vsel %vm896_vm3, %v1286_v42, 0.0 }
 0x2e4   :  { %v1275_v2 = vsub.f32 %v3918_v46, %v3939_v6  ;;  %v1289_v38 = vmul.f32 %v1273_v49, %v1273_v49  ;;  %v1310_v59 = vsel %vm896_vm3, %v1287_v44, 0.0  ;;  %v1276_v29 = vsub.f32 %v3925_v22, %v3939_v6 }
 0x2e5   :  { %v1301_v35 = vadd.f32 %v1300_v34, %v1299_v17  ;;  %v1290_v37 = vmul.f32 %v1274_v52, %v1274_v52  ;;  %v1312_v62 = vsel %vm896_vm3, %v1288_v54, 0.0  ;;  %v1277_v0 = vsub.f32 %v3933_v63, %v3939_v6 }
 0x2e6   :  { %v1291_v9 = vmul.f32 %v1275_v2, %v1275_v2  ;;  %v1314_v10 = vsel %vm896_vm3, %v1289_v38, 0.0  ;;  %v1278_v53 = vsub.f32 %v3930_v58, %v3939_v6  ;;  %v1292_v55 = vmul.f32 %v1276_v29, %v1276_v29 }
 0x2e7   :  { %v1303_v25 = vadd.f32 %v1302_v39, %v1301_v35  ;;  %v1316_v41 = vsel %vm896_vm3, %v1290_v37, 0.0  ;;  %v1293_v20 = vmul.f32 %v1277_v0, %v1277_v0  ;;  %v1341_v43 = vlaneseq }
 0x2e8   :  { %v1318_v8 = vsel %vm896_vm3, %v1291_v9, 0.0  ;;  %v1294_v23 = vmul.f32 %v1278_v53, %v1278_v53  ;;  %v1320_v26 = vsel %vm896_vm3, %v1292_v55, 0.0 }
 0x2e9   :  { %v1305_v36 = vadd.f32 %v1304_v48, %v1303_v25  ;;  %v1322_v30 = vsel %vm896_vm3, %v1293_v20, 0.0  ;;  %v1342_v42 = vshrl.u32 %v1341_v43, 7  ;;  %v1333_v48 = vld [vmem:[%s4347_s3] sm:$0x1]  ;;  %s2998_s3 = smov 48  }
 0x2ea   :  { %v1324_v40 = vsel %vm896_vm3, %v1294_v23, 0.0 }
 0x2eb   :  { %v1307_v51 = vadd.f32 %v1306_v50, %v1305_v36  ;;  %v1343_v36 = vsub.s32 0, %v1342_v42  ;;  %v1337_v50 = vld [vmem:[%s4348_s4] sm:$0x1]  ;;  %s2999_s4 = smov 40  }
 0x2ed   :  { %v1309_v27 = vadd.f32 %v1308_v47, %v1307_v51 }
 0x2ef   :  { %v1311_v32 = vadd.f32 %v1310_v59, %v1309_v27 }
 0x2f1   :  { %v1313_v60 = vadd.f32 %v1312_v62, %v1311_v32 }
 0x2f3   :  { %v1315_v31 = vadd.f32 %v1314_v10, %v1313_v60 }
 0x2f5   :  { %v1317_v45 = vadd.f32 %v1316_v41, %v1315_v31 }
 0x2f7   :  { %v1319_v21 = vadd.f32 %v1318_v8, %v1317_v45 }
 0x2f9   :  { %v1321_v57 = vadd.f32 %v1320_v26, %v1319_v21 }
 0x2fb   :  { %v1323_v5 = vadd.f32 %v1322_v30, %v1321_v57 }
 0x2fd   :  { %v1325_v17 = vadd.f32 %v1324_v40, %v1323_v5 }
 0x2ff   :  { %v1326_v12 = vrot.slane %v1325_v17, 4 }
 0x301   :  { %v1327_v33 = vadd.f32 %v1326_v12, %v1325_v17 }
 0x303   :  { %v1328_v34 = vrot.slane %v1327_v33, 2 }
 0x305   :  { %v1329_v35 = vadd.f32 %v1328_v34, %v1327_v33 }
 0x307   :  { %v1330_v1 = vrot.slane %v1329_v35, 1 }
 0x309   :  { %v1331_v14 = vadd.f32 %v1330_v1, %v1329_v35  ;;  %v1492_v1 = vld [vmem:[#allocation3 + $0x2] sm:$0xff] }
 0x30b   :  { %v1332_v39 = vmul.f32 0.0078125, %v1331_v14 }
 0x30d   :  { %v1334_v25 = vadd.f32 1e-05, %v1332_v39 }
 0x30f   :  { %2960 = vrsqrt.f32 %v1334_v25 }
 0x319   :  { %v2961_v49 = vpop.eup %2960 }
 0x31a   :  { %v1336_v44 = vmul.f32 %v2961_v49, %v1333_v48 }
 0x31c   :  { %v1338_v51 = vmul.f32 %v1336_v44, %v3939_v6  ;;  %v1344_v52 = vrot.slane %v1336_v44, %v1343_v36 }
 0x31e   :  { %v1339_v54 = vsub.f32 %v1337_v50, %v1338_v51  ;;  %v1360_v47 = vmul.f32 %v1344_v52, %v3933_v63  ;;  %v1346_v27 = vmul.f32 %v1344_v52, %v3791_v3  ;;  %v1347_v2 = vmul.f32 %v1344_v52, %v3788_v13 }
 0x31f   :  { %v1348_v38 = vmul.f32 %v1344_v52, %v3794_v16  ;;  %v1349_v59 = vmul.f32 %v1344_v52, %v3803_v4  ;;  %v1350_v32 = vmul.f32 %v1344_v52, %v3806_v61  ;;  %v1351_v29 = vmul.f32 %v1344_v52, %v3813_v11 }
 0x320   :  { %v1366_v37 = vrot.slane %v1339_v54, %v1343_v36  ;;  %v1352_v62 = vmul.f32 %v1344_v52, %v3816_v24  ;;  %v1353_v6 = vmul.f32 %v1344_v52, %v3892_v56  ;;  %v1354_v60 = vmul.f32 %v1344_v52, %v3895_v28 }
 0x321   :  { %v1355_v63 = vmul.f32 %v1344_v52, %v3903_v18  ;;  %v1356_v3 = vmul.f32 %v1344_v52, %v3907_v19  ;;  %v1357_v13 = vmul.f32 %v1344_v52, %v3915_v15  ;;  %v1358_v16 = vmul.f32 %v1344_v52, %v3918_v46 }
 0x322   :  { %v1382_v4 = vadd.f32 %v1366_v37, %v1360_v47  ;;  %v1368_v0 = vadd.f32 %v1366_v37, %v1346_v27  ;;  %v1369_v61 = vadd.f32 %v1366_v37, %v1347_v2  ;;  %v1370_v9 = vadd.f32 %v1366_v37, %v1348_v38 }
 0x323   :  { %v1371_v11 = vadd.f32 %v1366_v37, %v1349_v59  ;;  %v1372_v10 = vadd.f32 %v1366_v37, %v1350_v32  ;;  %v1373_v31 = vadd.f32 %v1366_v37, %v1351_v29  ;;  %v1374_v24 = vadd.f32 %v1366_v37, %v1352_v62 }
 0x324   :  { %v1398_v53 = vmax.f32 %v1382_v4, 0.0  ;;  %v1384_v56 = vmax.f32 %v1368_v0, 0.0  ;;  %v1385_v55 = vmax.f32 %v1369_v61, 0.0  ;;  %v1386_v28 = vmax.f32 %v1370_v9, 0.0 }
 0x325   :  { %v1387_v41 = vmax.f32 %v1371_v11, 0.0  ;;  %v1388_v18 = vmax.f32 %v1372_v10, 0.0  ;;  %v1389_v45 = vmax.f32 %v1373_v31, 0.0  ;;  %v1390_v19 = vmax.f32 %v1374_v24, 0.0 }
 0x326   :  { %1415 = vst.msk [vmem:[#allocation3 + $0x111] sm:$0xff] %vm896_vm3, %v1398_v53  ;;  %1401 = vst.msk [vmem:[#allocation3 + $0x11] sm:$0xff] %vm896_vm3, %v1384_v56  ;;  %v1375_v15 = vadd.f32 %v1366_v37, %v1353_v6  ;;  %v1376_v46 = vadd.f32 %v1366_v37, %v1354_v60  ;;  %v1377_v20 = vadd.f32 %v1366_v37, %v1355_v63  ;;  %v3000_v38 = vmov 0.0|0.0  }
 0x327   :  { %1402 = vst.msk [vmem:[#allocation3 + $0x21] sm:$0xff] %vm896_vm3, %v1385_v55  ;;  %1403 = vst.msk [vmem:[#allocation3 + $0x31] sm:$0xff] %vm896_vm3, %v1386_v28  ;;  %v1378_v8 = vadd.f32 %v1366_v37, %v1356_v3  ;;  %v1379_v21 = vadd.f32 %v1366_v37, %v1357_v13  ;;  %v1380_v23 = vadd.f32 %v1366_v37, %v1358_v16  ;;  %2588 = vmatprep.subr.bf16.mxu1 %v3000_v38 }
 0x328   :  { %1404 = vst.msk [vmem:[#allocation3 + $0x41] sm:$0xff] %vm896_vm3, %v1387_v41  ;;  %1405 = vst.msk [vmem:[#allocation3 + $0x51] sm:$0xff] %vm896_vm3, %v1388_v18  ;;  %v1359_v26 = vmul.f32 %v1344_v52, %v3925_v22  ;;  %v1361_v57 = vmul.f32 %v1344_v52, %v3930_v58  ;;  %v1391_v30 = vmax.f32 %v1375_v15, 0.0  ;;  %v1392_v5 = vmax.f32 %v1376_v46, 0.0  ;;  %v1476_v22 = vld [vmem:[#allocation3 + $0x1] sm:$0xff] }
 0x329   :  { %1406 = vst.msk [vmem:[#allocation3 + $0x61] sm:$0xff] %vm896_vm3, %v1389_v45  ;;  %1407 = vst.msk [vmem:[#allocation3 + $0x71] sm:$0xff] %vm896_vm3, %v1390_v19  ;;  %v1393_v40 = vmax.f32 %v1377_v20, 0.0  ;;  %v1394_v17 = vmax.f32 %v1378_v8, 0.0  ;;  %v1395_v12 = vmax.f32 %v1379_v21, 0.0  ;;  %v1396_v33 = vmax.f32 %v1380_v23, 0.0 }
 0x32a   :  { %v1381_v34 = vadd.f32 %v1366_v37, %v1359_v26  ;;  %v1383_v35 = vadd.f32 %v1366_v37, %v1361_v57  ;;  %1408 = vst.msk [vmem:[#allocation3 + $0x81] sm:$0xff] %vm896_vm3, %v1391_v30  ;;  %1409 = vst.msk [vmem:[#allocation3 + $0xb1] sm:$0xff] %vm896_vm3, %v1392_v5  ;;  %v1564_v8 = vld [vmem:[#allocation3 + $0x90] sm:$0xff] }
 0x32b   :  { %1410 = vst.msk [vmem:[#allocation3 + $0xc1] sm:$0xff] %vm896_vm3, %v1393_v40  ;;  %1411 = vst.msk [vmem:[#allocation3 + $0xd1] sm:$0xff] %vm896_vm3, %v1394_v17  ;;  %v1596_v57 = vld [vmem:[#allocation3 + $0x92] sm:$0xff]  ;;  %v1500_v17 = vld [vmem:[#allocation3 + $0xa2] sm:$0xff] }
 0x32c   :  { %1412 = vst.msk [vmem:[#allocation3 + $0xe1] sm:$0xff] %vm896_vm3, %v1395_v12  ;;  %1413 = vst.msk [vmem:[#allocation3 + $0xf1] sm:$0xff] %vm896_vm3, %v1396_v33  ;;  %v1397_v58 = vmax.f32 %v1381_v34, 0.0  ;;  %v1399_v14 = vmax.f32 %v1383_v35, 0.0  ;;  %v1580_v30 = vld [vmem:[#allocation3 + $0x91] sm:$0xff]  ;;  %v1484_v33 = vld [vmem:[#allocation3 + $0xa1] sm:$0xff] }
 0x32d   :  { %v1493_v39 = vld [vmem:[#allocation3 + $0x12] sm:$0xff] }
 0x32e   :  { %v1477_v25 = vld [vmem:[#allocation3 + $0x11] sm:$0xff]  ;;  %1414 = vst.msk [vmem:[#allocation3 + $0x101] sm:$0xff] %vm896_vm3, %v1397_v58  ;;  %1416 = vst.msk [vmem:[#allocation3 + $0x121] sm:$0xff] %vm896_vm3, %v1399_v14  ;;  %v2643_v43 = vpack.i.bf16 %v1493_v39, %v1492_v1  ;;  %v1525_v48 = vld [vmem:[#allocation3 + $0x21] sm:$0xff] }
 0x32f   :  { %v2638_v42 = vpack.i.bf16 %v1477_v25, %v1476_v22  ;;  %v4028_v36 = vld [vmem:[#allocation3 + $0x10] sm:$0xff]  ;;  %v4030_v49 = vld [vmem:[#allocation3 + $0x20] sm:$0xff]  ;;  %v2653_v44 = vpack.i.bf16 %v1525_v48, %v1477_v25 }
 0x330   :  { %2644 = vrot.lane.b32.xlu1 %v2643_v43, %s2993_s14  ;;  %v2648_v50 = vpack.i.bf16 %v4030_v49, %v4028_v36  ;;  %v4036_v51 = vld [vmem:[#allocation3 + $0x30] sm:$0xff]  ;;  %v1541_v52 = vld [vmem:[#allocation3 + $0x22] sm:$0xff] }
 0x331   :  { %2639 = vrot.lane.b32.xlu0 %v2638_v42, %s2991_s0  ;;  %v2663_v54 = vpack.i.bf16 %v4036_v51, %v4030_v49  ;;  %v2658_v47 = vpack.i.bf16 %v1541_v52, %v1493_v39  ;;  %v1590_v27 = vld [vmem:[#allocation3 + $0x32] sm:$0xff]  ;;  %v1527_v29 = vld [vmem:[#allocation3 + $0x41] sm:$0xff] }
 0x332   :  { %v1574_v2 = vld [vmem:[#allocation3 + $0x31] sm:$0xff]  ;;  %v2673_v59 = vpack.i.bf16 %v1590_v27, %v1541_v52  ;;  %v4047_v37 = vld [vmem:[#allocation3 + $0x40] sm:$0xff] }
 0x333   :  { %v2668_v32 = vpack.i.bf16 %v1574_v2, %v1525_v48  ;;  %v2693_v62 = vpack.i.bf16 %v1527_v29, %v1574_v2  ;;  %v2688_v6 = vpack.i.bf16 %v4047_v37, %v4036_v51  ;;  %v4053_v60 = vld [vmem:[#allocation3 + $0x50] sm:$0xff]  ;;  %v1543_v63 = vld [vmem:[#allocation3 + $0x42] sm:$0xff] }
 0x334   :  { %2654 = vrot.lane.b32.xlu1 %v2653_v44, %s2997_s29  ;;  %v2703_v3 = vpack.i.bf16 %v4053_v60, %v4047_v37  ;;  %v2698_v13 = vpack.i.bf16 %v1543_v63, %v1590_v27  ;;  %v1592_v16 = vld [vmem:[#allocation3 + $0x52] sm:$0xff]  ;;  %v1529_v9 = vld [vmem:[#allocation3 + $0x61] sm:$0xff] }
 0x335   :  { %2649 = vrot.lane.b32.xlu0 %v2648_v50, %s2995_s20  ;;  %v1576_v4 = vld [vmem:[#allocation3 + $0x51] sm:$0xff]  ;;  %v2713_v0 = vpack.i.bf16 %v1592_v16, %v1543_v63  ;;  %v4063_v11 = vld [vmem:[#allocation3 + $0x60] sm:$0xff] }
 0x336   :  { %v2708_v61 = vpack.i.bf16 %v1576_v4, %v1527_v29  ;;  %v2733_v10 = vpack.i.bf16 %v1529_v9, %v1576_v4  ;;  %v2728_v31 = vpack.i.bf16 %v4063_v11, %v4053_v60  ;;  %v4069_v24 = vld [vmem:[#allocation3 + $0x70] sm:$0xff]  ;;  %v1545_v53 = vld [vmem:[#allocation3 + $0x62] sm:$0xff] }
 0x337   :  { %v2743_v56 = vpack.i.bf16 %v4069_v24, %v4063_v11  ;;  %v2738_v55 = vpack.i.bf16 %v1545_v53, %v1592_v16  ;;  %v1594_v28 = vld [vmem:[#allocation3 + $0x72] sm:$0xff]  ;;  %v1531_v19 = vld [vmem:[#allocation3 + $0x81] sm:$0xff] }
 0x338   :  { %2664 = vrot.lane.b32.xlu1 %v2663_v54, %s2998_s3  ;;  %v1578_v41 = vld [vmem:[#allocation3 + $0x71] sm:$0xff]  ;;  %v2753_v18 = vpack.i.bf16 %v1594_v28, %v1545_v53  ;;  %v1515_v15 = vld [vmem:[#allocation3 + $0x80] sm:$0xff]  ;;  %v2788_v40 = vpack.i.bf16 %v1580_v30, %v1531_v19 }
 0x339   :  { %2659 = vrot.lane.b32.xlu0 %v2658_v47, %s2999_s4  ;;  %v2748_v45 = vpack.i.bf16 %v1578_v41, %v1529_v9  ;;  %v2773_v46 = vpack.i.bf16 %v1531_v19, %v1578_v41  ;;  %v2768_v20 = vpack.i.bf16 %v1515_v15, %v4069_v24  ;;  %v1547_v21 = vld [vmem:[#allocation3 + $0x82] sm:$0xff]  ;;  %v2783_v23 = vpack.i.bf16 %v1564_v8, %v1515_v15  ;;  %v1501_v12 = vld [vmem:[#allocation3 + $0xb2] sm:$0xff] }
 0x33a   :  { %v2778_v26 = vpack.i.bf16 %v1547_v21, %v1594_v28  ;;  %v2793_v5 = vpack.i.bf16 %v1596_v57, %v1547_v21  ;;  %v1485_v34 = vld [vmem:[#allocation3 + $0xb1] sm:$0xff]  ;;  %v2803_v35 = vpack.i.bf16 %v1501_v12, %v1500_v17  ;;  %v1533_v22 = vld [vmem:[#allocation3 + $0xc1] sm:$0xff] }
 0x33b   :  { %v2798_v1 = vpack.i.bf16 %v1485_v34, %v1484_v33  ;;  %v4088_v58 = vld [vmem:[#allocation3 + $0xb0] sm:$0xff]  ;;  %v4090_v14 = vld [vmem:[#allocation3 + $0xc0] sm:$0xff]  ;;  %v2813_v39 = vpack.i.bf16 %v1533_v22, %v1485_v34 }
 0x33c   :  { %2674 = vrot.lane.b32.xlu1 %v2673_v59, %s3001_s13  ;;  %v2808_v25 = vpack.i.bf16 %v4090_v14, %v4088_v58  ;;  %v4096_v43 = vld [vmem:[#allocation3 + $0xd0] sm:$0xff]  ;;  %v1549_v42 = vld [vmem:[#allocation3 + $0xc2] sm:$0xff] }
 0x33d   :  { %2669 = vrot.lane.b32.xlu0 %v2668_v32, %s3002_s25  ;;  %v2823_v48 = vpack.i.bf16 %v4096_v43, %v4090_v14  ;;  %v2818_v44 = vpack.i.bf16 %v1549_v42, %v1501_v12  ;;  %v1598_v50 = vld [vmem:[#allocation3 + $0xd2] sm:$0xff]  ;;  %v1535_v27 = vld [vmem:[#allocation3 + $0xe1] sm:$0xff] }
 0x33e   :  { %v1582_v52 = vld [vmem:[#allocation3 + $0xd1] sm:$0xff]  ;;  %v2833_v54 = vpack.i.bf16 %v1598_v50, %v1549_v42  ;;  %v4106_v2 = vld [vmem:[#allocation3 + $0xe0] sm:$0xff] }
 0x33f   :  { %v2828_v47 = vpack.i.bf16 %v1582_v52, %v1533_v22  ;;  %v4112_v29 = vld [vmem:[#allocation3 + $0xf0] sm:$0xff]  ;;  %v1553_v53 = vld [vmem:[#allocation3 + $0x102] sm:$0xff] }
 0x340   :  { %2684 = vrot.lane.b32.xlu1 %v2673_v59, %s2993_s14  ;;  %v2853_v59 = vpack.i.bf16 %v1535_v27, %v1582_v52  ;;  %v1602_v28 = vld [vmem:[#allocation3 + $0x112] sm:$0xff]  ;;  %v1539_v19 = vld [vmem:[#allocation3 + $0x121] sm:$0xff] }
 0x341   :  { %2679 = vrot.lane.b32.xlu0 %v2668_v32, %s2991_s0  ;;  %v2848_v32 = vpack.i.bf16 %v4106_v2, %v4096_v43  ;;  %v1586_v41 = vld [vmem:[#allocation3 + $0x111] sm:$0xff]  ;;  %v1523_v15 = vld [vmem:[#allocation3 + $0x120] sm:$0xff] }
 0x342   :  { %v2933_v21 = vpack.i.bf16 %v1539_v19, %v1586_v41  ;;  %v1572_v30 = vld [vmem:[#allocation3 + $0x130] sm:$0xff] }
 0x344   :  { %2694 = vrot.lane.b32.xlu1 %v2693_v62, %s2997_s29  ;;  %v1551_v62 = vld [vmem:[#allocation3 + $0xe2] sm:$0xff] }
 0x345   :  { %2689 = vrot.lane.b32.xlu0 %v2688_v6, %s2995_s20  ;;  %v2863_v6 = vpack.i.bf16 %v4112_v29, %v4106_v2  ;;  %v2858_v63 = vpack.i.bf16 %v1551_v62, %v1598_v50 }
 0x348   :  { %2704 = vrot.lane.b32.xlu1 %v2703_v3, %s2998_s3  ;;  %v1600_v3 = vld [vmem:[#allocation3 + $0xf2] sm:$0xff] }
 0x349   :  { %2699 = vrot.lane.b32.xlu0 %v2698_v13, %s2999_s4  ;;  %v1584_v13 = vld [vmem:[#allocation3 + $0xf1] sm:$0xff]  ;;  %v2873_v16 = vpack.i.bf16 %v1600_v3, %v1551_v62 }
 0x34a   :  { %v2868_v4 = vpack.i.bf16 %v1584_v13, %v1535_v27 }
 0x34c   :  { %2714 = vrot.lane.b32.xlu1 %v2713_v0, %s3001_s13 }
 0x34d   :  { %2709 = vrot.lane.b32.xlu0 %v2708_v61, %s3002_s25 }
 0x350   :  { %2724 = vrot.lane.b32.xlu1 %v2713_v0, %s2993_s14  ;;  %v1537_v0 = vld [vmem:[#allocation3 + $0x101] sm:$0xff] }
 0x351   :  { %2719 = vrot.lane.b32.xlu0 %v2708_v61, %s2991_s0  ;;  %v4122_v61 = vld [vmem:[#allocation3 + $0x100] sm:$0xff]  ;;  %v2893_v9 = vpack.i.bf16 %v1537_v0, %v1584_v13 }
 0x354   :  { %2734 = vrot.lane.b32.xlu1 %v2733_v10, %s2997_s29  ;;  %v2888_v10 = vpack.i.bf16 %v4122_v61, %v4112_v29 }
 0x355   :  { %2729 = vrot.lane.b32.xlu0 %v2728_v31, %s2995_s20  ;;  %v4128_v31 = vld [vmem:[#allocation3 + $0x110] sm:$0xff] }
 0x358   :  { %2744 = vrot.lane.b32.xlu1 %v2743_v56, %s2998_s3  ;;  %v2903_v56 = vpack.i.bf16 %v4128_v31, %v4122_v61 }
 0x359   :  { %2739 = vrot.lane.b32.xlu0 %v2738_v55, %s2999_s4  ;;  %v2898_v55 = vpack.i.bf16 %v1553_v53, %v1600_v3 }
 0x35c   :  { %2754 = vrot.lane.b32.xlu1 %v2753_v18, %s3001_s13 }
 0x35d   :  { %2749 = vrot.lane.b32.xlu0 %v2748_v45, %s3002_s25 }
 0x360   :  { %2764 = vrot.lane.b32.xlu1 %v2753_v18, %s2993_s14  ;;  %v2913_v18 = vpack.i.bf16 %v1602_v28, %v1553_v53 }
 0x361   :  { %2759 = vrot.lane.b32.xlu0 %v2748_v45, %s2991_s0  ;;  %v2908_v45 = vpack.i.bf16 %v1586_v41, %v1537_v0 }
 0x364   :  { %2774 = vrot.lane.b32.xlu1 %v2773_v46, %s2997_s29 }
 0x365   :  { %2769 = vrot.lane.b32.xlu0 %v2768_v20, %s2995_s20  ;;  %v1460_v20 = vld [vmem:[#allocation3] sm:$0xff] }
 0x368   :  { %2784 = vrot.lane.b32.xlu1 %v2783_v23, %s2998_s3  ;;  %v2928_v23 = vpack.i.bf16 %v1523_v15, %v4128_v31 }
 0x369   :  { %2779 = vrot.lane.b32.xlu0 %v2778_v26, %s2999_s4 }
 0x36c   :  { %2794 = vrot.lane.b32.xlu1 %v2793_v5, %s3001_s13  ;;  %v1555_v5 = vld [vmem:[#allocation3 + $0x122] sm:$0xff] }
 0x36d   :  { %2789 = vrot.lane.b32.xlu0 %v2788_v40, %s3002_s25  ;;  %v2938_v22 = vpack.i.bf16 %v1555_v5, %v1602_v28 }
 0x370   :  { %2804 = vrot.lane.b32.xlu1 %v2803_v35, %s2993_s14 }
 0x371   :  { %2799 = vrot.lane.b32.xlu0 %v2798_v1, %s2991_s0  ;;  %v2943_v1 = vpack.i.bf16 %v1572_v30, %v1523_v15 }
 0x374   :  { %2814 = vrot.lane.b32.xlu1 %v2813_v39, %s2997_s29 }
 0x375   :  { %2809 = vrot.lane.b32.xlu0 %v2808_v25, %s2995_s20 }
 0x378   :  { %2824 = vrot.lane.b32.xlu1 %v2823_v48, %s2998_s3  ;;  %v1604_v48 = vld [vmem:[#allocation3 + $0x132] sm:$0xff] }
 0x379   :  { %2819 = vrot.lane.b32.xlu0 %v2818_v44, %s2999_s4  ;;  %v1588_v44 = vld [vmem:[#allocation3 + $0x131] sm:$0xff] }
 0x37c   :  { %2834 = vrot.lane.b32.xlu1 %v2833_v54, %s3001_s13 }
 0x37d   :  { %2829 = vrot.lane.b32.xlu0 %v2828_v47, %s3002_s25 }
 0x380   :  { %2844 = vrot.lane.b32.xlu1 %v2833_v54, %s2993_s14 }
 0x381   :  { %2839 = vrot.lane.b32.xlu0 %v2828_v47, %s2991_s0 }
 0x384   :  { %2854 = vrot.lane.b32.xlu1 %v2853_v59, %s2997_s29  ;;  %v2953_v59 = vpack.i.bf16 %v1604_v48, %v1555_v5 }
 0x385   :  { %2849 = vrot.lane.b32.xlu0 %v2848_v32, %s2995_s20  ;;  %v2948_v32 = vpack.i.bf16 %v1588_v44, %v1539_v19 }
 0x388   :  { %2864 = vrot.lane.b32.xlu1 %v2863_v6, %s2998_s3 }
 0x389   :  { %2859 = vrot.lane.b32.xlu0 %v2858_v63, %s2999_s4 }
 0x38c   :  { %2874 = vrot.lane.b32.xlu1 %v2873_v16, %s3001_s13 }
 0x38d   :  { %2869 = vrot.lane.b32.xlu0 %v2868_v4, %s3002_s25 }
 0x390   :  { %2884 = vrot.lane.b32.xlu1 %v2873_v16, %s2993_s14 }
 0x391   :  { %2879 = vrot.lane.b32.xlu0 %v2868_v4, %s2991_s0 }
 0x394   :  { %2894 = vrot.lane.b32.xlu1 %v2893_v9, %s2997_s29  ;;  %v3004_v9 = vmov 0  }
 0x395   :  { %2889 = vrot.lane.b32.xlu0 %v2888_v10, %s2995_s20  ;;  %v2250_v10 = vld [vmem:[%s4350_s6] sm:$0xff]  ;;  %2959 = vset.pattern.permute.xlu1 %v3004_v9 }
 0x396   :  { %2958 = vset.pattern.permute.xlu0 %v3004_v9 }
 0x398   :  { %2904 = vrot.lane.b32.xlu1 %v2903_v56, %s2998_s3 }
 0x399   :  { %2899 = vrot.lane.b32.xlu0 %v2898_v55, %s2999_s4 }
 0x39c   :  { %2914 = vrot.lane.b32.xlu1 %v2913_v18, %s3001_s13 }
 0x39d   :  { %2909 = vrot.lane.b32.xlu0 %v2908_v45, %s3002_s25 }
 0x3a0   :  { %2924 = vrot.lane.b32.xlu1 %v2913_v18, %s2993_s14 }
 0x3a1   :  { %2919 = vrot.lane.b32.xlu0 %v2908_v45, %s2991_s0 }
 0x3a2   :  { %v2645_v46 = vpop.permute.xlu1 %2644 }
 0x3a3   :  { %v2640_v8 = vpop.permute.xlu0 %2639  ;;  %v2647_v40 = vunpack.i.h.bf16 %v2645_v46  ;;  %v2646_v17 = vunpack.i.l.bf16 %v2645_v46 }
 0x3a4   :  { %v2642_v26 = vunpack.i.h.bf16 %v2640_v8  ;;  %v2641_v57 = vunpack.i.l.bf16 %v2640_v8  ;;  %2934 = vrot.lane.b32.xlu1 %v2933_v21, %s2997_s29 }
 0x3a5   :  { %2929 = vrot.lane.b32.xlu0 %v2928_v23, %s2995_s20  ;;  %s2414_s20 = sshll.u32 %s3005_s19, 4  ;;  %s2415_s20 = int_to_ptr.vmem [resolvable:$true] %s2414_s20 }
 0x3a6   :  { %v2117_v12 = vsel %vm896_vm3, %v1460_v20, %v2641_v57  ;;  %v2118_v33 = vsel %vm896_vm3, %v4028_v36, %v2642_v26  ;;  %v2655_v34 = vpop.permute.xlu1 %2654  ;;  %p2969_p1 = scmp.lt.s32.totalorder %s2415_s20, %s2415_s20 }
 0x3a7   :  { %v2650_v35 = vpop.permute.xlu0 %2649  ;;  %v2656_v39 = vunpack.i.l.bf16 %v2655_v34  ;;  %v2657_v50 = vunpack.i.h.bf16 %v2655_v34  ;;  %v2133_v52 = vsel %vm930_vm6, %v2117_v12, %v2646_v17  ;;  %v2134_v54 = vsel %vm930_vm6, %v2118_v33, %v2647_v40 }
 0x3a8   :  { %v2652_v25 = vunpack.i.h.bf16 %v2650_v35  ;;  %v2651_v42 = vunpack.i.l.bf16 %v2650_v35  ;;  %2944 = vrot.lane.b32.xlu1 %v2943_v1, %s2998_s3 }
 0x3a9   :  { %2939 = vrot.lane.b32.xlu0 %v2938_v22, %s2999_s4 }
 0x3aa   :  { %v2149_v36 = vsel %vm964_vm8, %v2133_v52, %v2651_v42  ;;  %v2150_v47 = vsel %vm964_vm8, %v2134_v54, %v2652_v25  ;;  %v2665_v27 = vpop.permute.xlu1 %2664 }
 0x3ab   :  { %v2660_v7 = vpop.permute.xlu0 %2659  ;;  %v2165_v63 = vsel %vm998_vm10, %v2149_v36, %v2656_v39  ;;  %v2667_v3 = vunpack.i.h.bf16 %v2665_v27  ;;  %v2666_v13 = vunpack.i.l.bf16 %v2665_v27  ;;  %v2166_v16 = vsel %vm998_vm10, %v2150_v47, %v2657_v50 }
 0x3ac   :  { %v2662_v62 = vunpack.i.h.bf16 %v2660_v7  ;;  %v2661_v6 = vunpack.i.l.bf16 %v2660_v7  ;;  %2954 = vrot.lane.b32.xlu1 %v2953_v59, %s3001_s13 }
 0x3ad   :  { %2949 = vrot.lane.b32.xlu0 %v2948_v32, %s3002_s25 }
 0x3ae   :  { %v2182_v4 = vsel %vm2181_vm15, %v2165_v63, %v2661_v6  ;;  %v2183_v0 = vsel %vm2181_vm15, %v2166_v16, %v2662_v62  ;;  %v2675_v53 = vpop.permute.xlu1 %2674 }
 0x3af   :  { %v2670_v56 = vpop.permute.xlu0 %2669  ;;  %v2677_v55 = vunpack.i.h.bf16 %v2675_v53  ;;  %v2676_v28 = vunpack.i.l.bf16 %v2675_v53  ;;  %v2199_v45 = vsel %vm2198_vm0, %v2182_v4, %v2666_v13  ;;  %v2200_v19 = vsel %vm2198_vm0, %v2183_v0, %v2667_v3 }
 0x3b0   :  { %v2672_v41 = vunpack.i.h.bf16 %v2670_v56  ;;  %v2671_v18 = vunpack.i.l.bf16 %v2670_v56 }
 0x3b1   :  { %2253 = vperm.xlu0 %2958, %v2250_v10  }
 0x3b2   :  { %v2216_v15 = vsel %vm2215_vm1, %v2199_v45, %v2671_v18  ;;  %v2217_v46 = vsel %vm2215_vm1, %v2200_v19, %v2672_v41  ;;  %v2685_v20 = vpop.permute.xlu1 %2684 }
 0x3b3   :  { %v2680_v8 = vpop.permute.xlu0 %2679  ;;  %v2233_v21 = vsel %vm2232_vm2, %v2216_v15, %v2676_v28  ;;  %v2234_v23 = vsel %vm2232_vm2, %v2217_v46, %v2677_v55  ;;  %v2687_v5 = vunpack.i.h.bf16 %v2685_v20  ;;  %v2686_v40 = vunpack.i.l.bf16 %v2685_v20 }
 0x3b4   :  { %v2682_v26 = vunpack.i.h.bf16 %v2680_v8  ;;  %v2681_v57 = vunpack.i.l.bf16 %v2680_v8  ;;  %v2589_v17 = vpack.c.bf16 %v2234_v23, %v2233_v21 }
 0x3b6   :  { %v2120_v12 = vsel %vm896_vm3, %v4036_v51, %v2682_v26  ;;  %v2119_v33 = vsel %vm896_vm3, %v4030_v49, %v2681_v57  ;;  %2591 = vmatpush3.bf16.xpose.msk.msra.mxu1 %vm4170_vm5, %v2589_v17  ;;  %v2695_v34 = vpop.permute.xlu1 %2694 }
 0x3b7   :  { %v2690_v35 = vpop.permute.xlu0 %2689  ;;  %2592 = vmatprep.subr.bf16.mxu1 %v3000_v38  ;;  %v2697_v39 = vunpack.i.h.bf16 %v2695_v34  ;;  %v2696_v25 = vunpack.i.l.bf16 %v2695_v34  ;;  %v2135_v42 = vsel %vm930_vm6, %v2119_v33, %v2686_v40  ;;  %v2136_v48 = vsel %vm930_vm6, %v2120_v12, %v2687_v5 }
 0x3b8   :  { %v2692_v1 = vunpack.i.h.bf16 %v2690_v35  ;;  %v2691_v22 = vunpack.i.l.bf16 %v2690_v35 }
 0x3ba   :  { %v2151_v51 = vsel %vm964_vm8, %v2135_v42, %v2691_v22  ;;  %v2152_v44 = vsel %vm964_vm8, %v2136_v48, %v2692_v1  ;;  %v2705_v49 = vpop.permute.xlu1 %2704 }
 0x3bb   :  { %v2700_v50 = vpop.permute.xlu0 %2699  ;;  %v2707_v36 = vunpack.i.h.bf16 %v2705_v49  ;;  %v2706_v47 = vunpack.i.l.bf16 %v2705_v49  ;;  %v2167_v27 = vsel %vm998_vm10, %v2151_v51, %v2696_v25  ;;  %v2168_v7 = vsel %vm998_vm10, %v2152_v44, %v2697_v39 }
 0x3bc   :  { %v2702_v52 = vunpack.i.h.bf16 %v2700_v50  ;;  %v2701_v54 = vunpack.i.l.bf16 %v2700_v50 }
 0x3be   :  { %v2184_v59 = vsel %vm2181_vm15, %v2167_v27, %v2701_v54  ;;  %v2185_v32 = vsel %vm2181_vm15, %v2168_v7, %v2702_v52  ;;  %v2715_v62 = vpop.permute.xlu1 %2714 }
 0x3bf   :  { %v2710_v6 = vpop.permute.xlu0 %2709  ;;  %v2717_v63 = vunpack.i.h.bf16 %v2715_v62  ;;  %v2716_v3 = vunpack.i.l.bf16 %v2715_v62  ;;  %v2201_v4 = vsel %vm2198_vm0, %v2184_v59, %v2706_v47  ;;  %v2202_v0 = vsel %vm2198_vm0, %v2185_v32, %v2707_v36 }
 0x3c0   :  { %v2712_v13 = vunpack.i.h.bf16 %v2710_v6  ;;  %v2711_v16 = vunpack.i.l.bf16 %v2710_v6 }
 0x3c2   :  { %v2218_v9 = vsel %vm2215_vm1, %v2201_v4, %v2711_v16  ;;  %v2219_v10 = vsel %vm2215_vm1, %v2202_v0, %v2712_v13  ;;  %v2725_v53 = vpop.permute.xlu1 %2724 }
 0x3c3   :  { %v2720_v56 = vpop.permute.xlu0 %2719  ;;  %v2235_v55 = vsel %vm2232_vm2, %v2218_v9, %v2716_v3  ;;  %v2236_v28 = vsel %vm2232_vm2, %v2219_v10, %v2717_v63  ;;  %v2727_v45 = vunpack.i.h.bf16 %v2725_v53  ;;  %v2726_v19 = vunpack.i.l.bf16 %v2725_v53 }
 0x3c4   :  { %v2722_v41 = vunpack.i.h.bf16 %v2720_v56  ;;  %v2721_v18 = vunpack.i.l.bf16 %v2720_v56  ;;  %v2593_v15 = vpack.c.bf16 %v2236_v28, %v2235_v55 }
 0x3c6   :  { %v2122_v46 = vsel %vm896_vm3, %v4053_v60, %v2722_v41  ;;  %v2121_v20 = vsel %vm896_vm3, %v4047_v37, %v2721_v18  ;;  %2595 = vmatpush3.bf16.xpose.msk.msra.mxu1 %vm4170_vm5, %v2593_v15  ;;  %v2735_v8 = vpop.permute.xlu1 %2734 }
 0x3c7   :  { %v2730_v21 = vpop.permute.xlu0 %2729  ;;  %2596 = vmatprep.subr.bf16.mxu1 %v3000_v38  ;;  %v2737_v57 = vunpack.i.h.bf16 %v2735_v8  ;;  %v2736_v5 = vunpack.i.l.bf16 %v2735_v8  ;;  %v2137_v40 = vsel %vm930_vm6, %v2121_v20, %v2726_v19  ;;  %v2138_v17 = vsel %vm930_vm6, %v2122_v46, %v2727_v45 }
 0x3c8   :  { %v2732_v23 = vunpack.i.h.bf16 %v2730_v21  ;;  %v2731_v26 = vunpack.i.l.bf16 %v2730_v21 }
 0x3ca   :  { %v2153_v60 = vsel %vm964_vm8, %v2137_v40, %v2731_v26  ;;  %v2154_v12 = vsel %vm964_vm8, %v2138_v17, %v2732_v23  ;;  %v2745_v37 = vpop.permute.xlu1 %2744 }
 0x3cb   :  { %v2740_v33 = vpop.permute.xlu0 %2739  ;;  %v2747_v1 = vunpack.i.h.bf16 %v2745_v37  ;;  %v2746_v22 = vunpack.i.l.bf16 %v2745_v37  ;;  %v2169_v39 = vsel %vm998_vm10, %v2153_v60, %v2736_v5  ;;  %v2170_v25 = vsel %vm998_vm10, %v2154_v12, %v2737_v57 }
 0x3cc   :  { %v2742_v34 = vunpack.i.h.bf16 %v2740_v33  ;;  %v2741_v35 = vunpack.i.l.bf16 %v2740_v33 }
 0x3ce   :  { %v2186_v42 = vsel %vm2181_vm15, %v2169_v39, %v2741_v35  ;;  %v2187_v48 = vsel %vm2181_vm15, %v2170_v25, %v2742_v34  ;;  %v2755_v51 = vpop.permute.xlu1 %2754  ;;  %v1468_v25 = vld [vmem:[#allocation3 + $0xa0] sm:$0xff] }
 0x3cf   :  { %v2750_v44 = vpop.permute.xlu0 %2749  ;;  %v2757_v49 = vunpack.i.h.bf16 %v2755_v51  ;;  %v2756_v50 = vunpack.i.l.bf16 %v2755_v51  ;;  %v2203_v36 = vsel %vm2198_vm0, %v2186_v42, %v2746_v22  ;;  %v2204_v47 = vsel %vm2198_vm0, %v2187_v48, %v2747_v1 }
 0x3d0   :  { %v2752_v52 = vunpack.i.h.bf16 %v2750_v44  ;;  %v2751_v54 = vunpack.i.l.bf16 %v2750_v44 }
 0x3d2   :  { %v2220_v27 = vsel %vm2215_vm1, %v2203_v36, %v2751_v54  ;;  %v2221_v7 = vsel %vm2215_vm1, %v2204_v47, %v2752_v52  ;;  %v2765_v59 = vpop.permute.xlu1 %2764 }
 0x3d3   :  { %v2760_v32 = vpop.permute.xlu0 %2759  ;;  %v2237_v62 = vsel %vm2232_vm2, %v2220_v27, %v2756_v50  ;;  %v2238_v6 = vsel %vm2232_vm2, %v2221_v7, %v2757_v49  ;;  %v2767_v13 = vunpack.i.h.bf16 %v2765_v59  ;;  %v2766_v16 = vunpack.i.l.bf16 %v2765_v59 }
 0x3d4   :  { %v2762_v63 = vunpack.i.h.bf16 %v2760_v32  ;;  %v2761_v3 = vunpack.i.l.bf16 %v2760_v32  ;;  %v2597_v4 = vpack.c.bf16 %v2238_v6, %v2237_v62 }
 0x3d6   :  { %v2124_v0 = vsel %vm896_vm3, %v4069_v24, %v2762_v63  ;;  %v2123_v9 = vsel %vm896_vm3, %v4063_v11, %v2761_v3  ;;  %2599 = vmatpush3.bf16.xpose.msk.msra.mxu1 %vm4170_vm5, %v2597_v4  ;;  %v2775_v10 = vpop.permute.xlu1 %2774 }
 0x3d7   :  { %v2770_v53 = vpop.permute.xlu0 %2769  ;;  %2600 = vmatprep.subr.bf16.mxu1 %v3000_v38  ;;  %v2777_v28 = vunpack.i.h.bf16 %v2775_v10  ;;  %v2776_v41 = vunpack.i.l.bf16 %v2775_v10  ;;  %v2139_v18 = vsel %vm930_vm6, %v2123_v9, %v2766_v16  ;;  %v2140_v45 = vsel %vm930_vm6, %v2124_v0, %v2767_v13 }
 0x3d8   :  { %v2772_v56 = vunpack.i.h.bf16 %v2770_v53  ;;  %v2771_v55 = vunpack.i.l.bf16 %v2770_v53 }
 0x3da   :  { %v2155_v24 = vsel %vm964_vm8, %v2139_v18, %v2771_v55  ;;  %v2156_v19 = vsel %vm964_vm8, %v2140_v45, %v2772_v56  ;;  %v2785_v11 = vpop.permute.xlu1 %2784 }
 0x3db   :  { %v2780_v15 = vpop.permute.xlu0 %2779  ;;  %v2787_v8 = vunpack.i.h.bf16 %v2785_v11  ;;  %v2786_v21 = vunpack.i.l.bf16 %v2785_v11  ;;  %v2171_v23 = vsel %vm998_vm10, %v2155_v24, %v2776_v41  ;;  %v2172_v26 = vsel %vm998_vm10, %v2156_v19, %v2777_v28 }
 0x3dc   :  { %v2782_v46 = vunpack.i.h.bf16 %v2780_v15  ;;  %v2781_v20 = vunpack.i.l.bf16 %v2780_v15 }
 0x3de   :  { %v2188_v57 = vsel %vm2181_vm15, %v2171_v23, %v2781_v20  ;;  %v2189_v5 = vsel %vm2181_vm15, %v2172_v26, %v2782_v46  ;;  %v2795_v40 = vpop.permute.xlu1 %2794 }
 0x3df   :  { %v2790_v17 = vpop.permute.xlu0 %2789  ;;  %v2797_v60 = vunpack.i.h.bf16 %v2795_v40  ;;  %v2796_v12 = vunpack.i.l.bf16 %v2795_v40  ;;  %v2205_v34 = vsel %vm2198_vm0, %v2188_v57, %v2786_v21  ;;  %v2206_v35 = vsel %vm2198_vm0, %v2189_v5, %v2787_v8 }
 0x3e0   :  { %v2792_v37 = vunpack.i.h.bf16 %v2790_v17  ;;  %v2791_v33 = vunpack.i.l.bf16 %v2790_v17 }
 0x3e2   :  { %v2222_v1 = vsel %vm2215_vm1, %v2205_v34, %v2791_v33  ;;  %v2223_v22 = vsel %vm2215_vm1, %v2206_v35, %v2792_v37  ;;  %v2805_v39 = vpop.permute.xlu1 %2804 }
 0x3e3   :  { %v2800_v42 = vpop.permute.xlu0 %2799  ;;  %v2239_v48 = vsel %vm2232_vm2, %v2222_v1, %v2796_v12  ;;  %v2240_v51 = vsel %vm2232_vm2, %v2223_v22, %v2797_v60  ;;  %v2807_v50 = vunpack.i.h.bf16 %v2805_v39  ;;  %v2806_v52 = vunpack.i.l.bf16 %v2805_v39 }
 0x3e4   :  { %v2802_v44 = vunpack.i.h.bf16 %v2800_v42  ;;  %v2801_v49 = vunpack.i.l.bf16 %v2800_v42  ;;  %v2601_v54 = vpack.c.bf16 %v2240_v51, %v2239_v48 }
 0x3e6   :  { %v2126_v36 = vsel %vm896_vm3, %v4088_v58, %v2802_v44  ;;  %v2125_v47 = vsel %vm896_vm3, %v1468_v25, %v2801_v49  ;;  %2603 = vmatpush3.bf16.xpose.msk.msra.mxu1 %vm4170_vm5, %v2601_v54  ;;  %v2815_v27 = vpop.permute.xlu1 %2814 }
 0x3e7   :  { %v2810_v7 = vpop.permute.xlu0 %2809  ;;  %2604 = vmatprep.subr.bf16.mxu1 %v3000_v38  ;;  %v2817_v62 = vunpack.i.h.bf16 %v2815_v27  ;;  %v2816_v6 = vunpack.i.l.bf16 %v2815_v27  ;;  %v2141_v63 = vsel %vm930_vm6, %v2125_v47, %v2806_v52  ;;  %v2142_v3 = vsel %vm930_vm6, %v2126_v36, %v2807_v50 }
 0x3e8   :  { %v2812_v59 = vunpack.i.h.bf16 %v2810_v7  ;;  %v2811_v32 = vunpack.i.l.bf16 %v2810_v7 }
 0x3ea   :  { %v2157_v13 = vsel %vm964_vm8, %v2141_v63, %v2811_v32  ;;  %v2158_v58 = vsel %vm964_vm8, %v2142_v3, %v2812_v59  ;;  %v2825_v16 = vpop.permute.xlu1 %2824 }
 0x3eb   :  { %v2820_v4 = vpop.permute.xlu0 %2819  ;;  %v2827_v10 = vunpack.i.h.bf16 %v2825_v16  ;;  %v2826_v53 = vunpack.i.l.bf16 %v2825_v16  ;;  %v2173_v56 = vsel %vm998_vm10, %v2157_v13, %v2816_v6  ;;  %v2174_v55 = vsel %vm998_vm10, %v2158_v58, %v2817_v62 }
 0x3ec   :  { %v2822_v0 = vunpack.i.h.bf16 %v2820_v4  ;;  %v2821_v9 = vunpack.i.l.bf16 %v2820_v4 }
 0x3ee   :  { %v2190_v28 = vsel %vm2181_vm15, %v2173_v56, %v2821_v9  ;;  %v2191_v41 = vsel %vm2181_vm15, %v2174_v55, %v2822_v0  ;;  %v2835_v18 = vpop.permute.xlu1 %2834 }
 0x3ef   :  { %v2830_v45 = vpop.permute.xlu0 %2829  ;;  %v2837_v24 = vunpack.i.h.bf16 %v2835_v18  ;;  %v2836_v19 = vunpack.i.l.bf16 %v2835_v18  ;;  %v2207_v46 = vsel %vm2198_vm0, %v2190_v28, %v2826_v53  ;;  %v2208_v20 = vsel %vm2198_vm0, %v2191_v41, %v2827_v10 }
 0x3f0   :  { %v2832_v11 = vunpack.i.h.bf16 %v2830_v45  ;;  %v2831_v15 = vunpack.i.l.bf16 %v2830_v45 }
 0x3f2   :  { %v2224_v8 = vsel %vm2215_vm1, %v2207_v46, %v2831_v15  ;;  %v2225_v21 = vsel %vm2215_vm1, %v2208_v20, %v2832_v11  ;;  %v2845_v23 = vpop.permute.xlu1 %2844 }
 0x3f3   :  { %v2840_v26 = vpop.permute.xlu0 %2839  ;;  %v2241_v57 = vsel %vm2232_vm2, %v2224_v8, %v2836_v19  ;;  %v2242_v5 = vsel %vm2232_vm2, %v2225_v21, %v2837_v24  ;;  %v2847_v60 = vunpack.i.h.bf16 %v2845_v23  ;;  %v2846_v12 = vunpack.i.l.bf16 %v2845_v23 }
 0x3f4   :  { %v2842_v40 = vunpack.i.h.bf16 %v2840_v26  ;;  %v2841_v17 = vunpack.i.l.bf16 %v2840_v26  ;;  %v2605_v37 = vpack.c.bf16 %v2242_v5, %v2241_v57 }
 0x3f6   :  { %v2128_v33 = vsel %vm896_vm3, %v4096_v43, %v2842_v40  ;;  %v2127_v34 = vsel %vm896_vm3, %v4090_v14, %v2841_v17  ;;  %2607 = vmatpush3.bf16.xpose.msk.msra.mxu1 %vm4170_vm5, %v2605_v37  ;;  %v2855_v35 = vpop.permute.xlu1 %2854 }
 0x3f7   :  { %v2850_v1 = vpop.permute.xlu0 %2849  ;;  %2608 = vmatprep.subr.bf16.mxu1 %v3000_v38  ;;  %v2857_v25 = vunpack.i.h.bf16 %v2855_v35  ;;  %v2856_v42 = vunpack.i.l.bf16 %v2855_v35  ;;  %v2143_v48 = vsel %vm930_vm6, %v2127_v34, %v2846_v12  ;;  %v2144_v51 = vsel %vm930_vm6, %v2128_v33, %v2847_v60 }
 0x3f8   :  { %v2852_v22 = vunpack.i.h.bf16 %v2850_v1  ;;  %v2851_v39 = vunpack.i.l.bf16 %v2850_v1 }
 0x3fa   :  { %v2159_v43 = vsel %vm964_vm8, %v2143_v48, %v2851_v39  ;;  %v2160_v44 = vsel %vm964_vm8, %v2144_v51, %v2852_v22  ;;  %v2865_v14 = vpop.permute.xlu1 %2864 }
 0x3fb   :  { %v2860_v49 = vpop.permute.xlu0 %2859  ;;  %v2867_v54 = vunpack.i.h.bf16 %v2865_v14  ;;  %v2866_v36 = vunpack.i.l.bf16 %v2865_v14  ;;  %v2175_v47 = vsel %vm998_vm10, %v2159_v43, %v2856_v42  ;;  %v2176_v27 = vsel %vm998_vm10, %v2160_v44, %v2857_v25 }
 0x3fc   :  { %v2862_v50 = vunpack.i.h.bf16 %v2860_v49  ;;  %v2861_v52 = vunpack.i.l.bf16 %v2860_v49 }
 0x3fe   :  { %v2192_v7 = vsel %vm2181_vm15, %v2175_v47, %v2861_v52  ;;  %v2193_v59 = vsel %vm2181_vm15, %v2176_v27, %v2862_v50  ;;  %v2875_v32 = vpop.permute.xlu1 %2874 }
 0x3ff   :  { %v2870_v62 = vpop.permute.xlu0 %2869  ;;  %v2877_v6 = vunpack.i.h.bf16 %v2875_v32  ;;  %v2876_v63 = vunpack.i.l.bf16 %v2875_v32  ;;  %v2209_v58 = vsel %vm2198_vm0, %v2192_v7, %v2866_v36  ;;  %v2210_v16 = vsel %vm2198_vm0, %v2193_v59, %v2867_v54 }
 0x400   :  { %v2872_v3 = vunpack.i.h.bf16 %v2870_v62  ;;  %v2871_v13 = vunpack.i.l.bf16 %v2870_v62 }
 0x402   :  { %v2226_v4 = vsel %vm2215_vm1, %v2209_v58, %v2871_v13  ;;  %v2227_v0 = vsel %vm2215_vm1, %v2210_v16, %v2872_v3  ;;  %v2885_v9 = vpop.permute.xlu1 %2884 }
 0x403   :  { %v2880_v10 = vpop.permute.xlu0 %2879  ;;  %v2243_v53 = vsel %vm2232_vm2, %v2226_v4, %v2876_v63  ;;  %v2244_v56 = vsel %vm2232_vm2, %v2227_v0, %v2877_v6  ;;  %v2887_v41 = vunpack.i.h.bf16 %v2885_v9  ;;  %v2886_v18 = vunpack.i.l.bf16 %v2885_v9 }
 0x404   :  { %v2882_v55 = vunpack.i.h.bf16 %v2880_v10  ;;  %v2881_v28 = vunpack.i.l.bf16 %v2880_v10  ;;  %v2609_v45 = vpack.c.bf16 %v2244_v56, %v2243_v53 }
 0x406   :  { %v2130_v24 = vsel %vm896_vm3, %v4112_v29, %v2882_v55  ;;  %v2129_v19 = vsel %vm896_vm3, %v4106_v2, %v2881_v28  ;;  %2611 = vmatpush3.bf16.xpose.msk.msra.mxu1 %vm4170_vm5, %v2609_v45  ;;  %v2895_v11 = vpop.permute.xlu1 %2894 }
 0x407   :  { %v2890_v15 = vpop.permute.xlu0 %2889  ;;  %2612 = vmatprep.subr.bf16.mxu1 %v3000_v38  ;;  %v2897_v8 = vunpack.i.h.bf16 %v2895_v11  ;;  %v2896_v21 = vunpack.i.l.bf16 %v2895_v11  ;;  %v2145_v23 = vsel %vm930_vm6, %v2129_v19, %v2886_v18  ;;  %v2146_v26 = vsel %vm930_vm6, %v2130_v24, %v2887_v41 }
 0x408   :  { %v2892_v46 = vunpack.i.h.bf16 %v2890_v15  ;;  %v2891_v20 = vunpack.i.l.bf16 %v2890_v15 }
 0x40a   :  { %v2161_v29 = vsel %vm964_vm8, %v2145_v23, %v2891_v20  ;;  %v2162_v57 = vsel %vm964_vm8, %v2146_v26, %v2892_v46  ;;  %v2905_v2 = vpop.permute.xlu1 %2904 }
 0x40b   :  { %v2900_v5 = vpop.permute.xlu0 %2899  ;;  %v2907_v60 = vunpack.i.h.bf16 %v2905_v2  ;;  %v2906_v12 = vunpack.i.l.bf16 %v2905_v2  ;;  %v2177_v37 = vsel %vm998_vm10, %v2161_v29, %v2896_v21  ;;  %v2178_v33 = vsel %vm998_vm10, %v2162_v57, %v2897_v8 }
 0x40c   :  { %v2902_v40 = vunpack.i.h.bf16 %v2900_v5  ;;  %v2901_v17 = vunpack.i.l.bf16 %v2900_v5  ;;  %v2249_v5 = vld [vmem:[%s4349_s5] sm:$0xff] }
 0x40e   :  { %v2194_v34 = vsel %vm2181_vm15, %v2177_v37, %v2901_v17  ;;  %v2195_v35 = vsel %vm2181_vm15, %v2178_v33, %v2902_v40  ;;  %v2915_v1 = vpop.permute.xlu1 %2914 }
 0x40f   :  { %v2910_v22 = vpop.permute.xlu0 %2909  ;;  %v2917_v39 = vunpack.i.h.bf16 %v2915_v1  ;;  %v2916_v25 = vunpack.i.l.bf16 %v2915_v1  ;;  %v2211_v51 = vsel %vm2198_vm0, %v2194_v34, %v2906_v12  ;;  %v2212_v43 = vsel %vm2198_vm0, %v2195_v35, %v2907_v60 }
 0x410   :  { %v2912_v42 = vunpack.i.h.bf16 %v2910_v22  ;;  %v2911_v48 = vunpack.i.l.bf16 %v2910_v22 }
 0x412   :  { %v2228_v44 = vsel %vm2215_vm1, %v2211_v51, %v2911_v48  ;;  %v2229_v14 = vsel %vm2215_vm1, %v2212_v43, %v2912_v42  ;;  %v2925_v49 = vpop.permute.xlu1 %2924  ;;  %v2391_v48 = vld [vmem:[%s4352_s8] sm:$0xff] }
 0x413   :  { %v2920_v50 = vpop.permute.xlu0 %2919  ;;  %v2245_v52 = vsel %vm2232_vm2, %v2228_v44, %v2916_v25  ;;  %v2246_v54 = vsel %vm2232_vm2, %v2229_v14, %v2917_v39  ;;  %v2927_v27 = vunpack.i.h.bf16 %v2925_v49  ;;  %v2926_v7 = vunpack.i.l.bf16 %v2925_v49  ;;  %v2387_v39 = vld [vmem:[%s4351_s7] sm:$0xff]  ;;  %s2964_s7 = scalar_lea.vmem %s2415_s20, 128 }
 0x414   :  { %v2922_v36 = vunpack.i.h.bf16 %v2920_v50  ;;  %v2921_v47 = vunpack.i.l.bf16 %v2920_v50  ;;  %v2613_v59 = vpack.c.bf16 %v2246_v54, %v2245_v52  ;;  %p2965_p0 = scmp.ne.s32.totalorder %s2415_s20, %s2964_s7  ;;  %p2970_p2 = scmp.lt.s32.totalorder %s2964_s7, %s2964_s7 }
 0x416   :  { %v2132_v32 = vsel %vm896_vm3, %v4128_v31, %v2922_v36  ;;  %v2131_v62 = vsel %vm896_vm3, %v4122_v61, %v2921_v47  ;;  %2615 = vmatpush3.bf16.xpose.msk.msra.mxu1 %vm4170_vm5, %v2613_v59  ;;  %v2935_v6 = vpop.permute.xlu1 %2934  ;;  %p2971_p3 = por %p2970_p2, %p2969_p1 }
 0x417   :  { %v2930_v63 = vpop.permute.xlu0 %2929  ;;  %2616 = vmatprep.subr.bf16.mxu1 %v3000_v38  ;;  %v2937_v58 = vunpack.i.h.bf16 %v2935_v6  ;;  %v2936_v16 = vunpack.i.l.bf16 %v2935_v6  ;;  %v2147_v4 = vsel %vm930_vm6, %v2131_v62, %v2926_v7  ;;  %v2148_v0 = vsel %vm930_vm6, %v2132_v32, %v2927_v27 }
 0x418   :  { %v2932_v3 = vunpack.i.h.bf16 %v2930_v63  ;;  %v2931_v13 = vunpack.i.l.bf16 %v2930_v63  ;;  %p2972_p4 = pnand %p2971_p3, %p2965_p0 }
 0x41a   :  { %v2163_v31 = vsel %vm964_vm8, %v2147_v4, %v2931_v13  ;;  %v2164_v9 = vsel %vm964_vm8, %v2148_v0, %v2932_v3  ;;  %v2945_v61 = vpop.permute.xlu1 %2944 }
 0x41b   :  { %v2940_v10 = vpop.permute.xlu0 %2939  ;;  %v2947_v55 = vunpack.i.h.bf16 %v2945_v61  ;;  %v2946_v28 = vunpack.i.l.bf16 %v2945_v61  ;;  %v2179_v41 = vsel %vm998_vm10, %v2163_v31, %v2936_v16  ;;  %v2180_v38 = vsel %vm998_vm10, %v2164_v9, %v2937_v58 }
 0x41c   :  { %v2942_v53 = vunpack.i.h.bf16 %v2940_v10  ;;  %v2941_v56 = vunpack.i.l.bf16 %v2940_v10 }
 0x41e   :  { %v2196_v18 = vsel %vm2181_vm15, %v2179_v41, %v2941_v56  ;;  %v2197_v45 = vsel %vm2181_vm15, %v2180_v38, %v2942_v53  ;;  %v2955_v24 = vpop.permute.xlu1 %2954 }
 0x41f   :  { %v2950_v19 = vpop.permute.xlu0 %2949  ;;  %v2957_v11 = vunpack.i.h.bf16 %v2955_v24  ;;  %v2956_v15 = vunpack.i.l.bf16 %v2955_v24  ;;  %v2213_v8 = vsel %vm2198_vm0, %v2196_v18, %v2946_v28  ;;  %v2214_v21 = vsel %vm2198_vm0, %v2197_v45, %v2947_v55 }
 0x420   :  { %v2952_v46 = vunpack.i.h.bf16 %v2950_v19  ;;  %v2951_v20 = vunpack.i.l.bf16 %v2950_v19 }
 0x422   :  { %v2230_v23 = vsel %vm2215_vm1, %v2213_v8, %v2951_v20  ;;  %v2231_v26 = vsel %vm2215_vm1, %v2214_v21, %v2952_v46 }
 0x423   :  { %v2247_v29 = vsel %vm2232_vm2, %v2230_v23, %v2956_v15  ;;  %v2248_v57 = vsel %vm2232_vm2, %v2231_v26, %v2957_v11 }
 0x424   :  { %v2617_v2 = vpack.c.bf16 %v2248_v57, %v2247_v29 }
 0x426   :  { %2619 = vmatpush3.bf16.xpose.msk.msra.mxu1 %vm4170_vm5, %v2617_v2 }
 0x42d   :  { %2578 = vmatmul.mubr.msk.f32.vlgmr.msra.gmra.mrb[0].mxu1 %vm2256_vm4, %v2249_v5 }
 0x430   :  { %v2254_v40 = vpop.permute.xlu0 %2253 }
 0x500   :  { %v2374_v17 = vpop.f32.mrb[0].mxu1 }
 0x501   :  { %v2375_v60 = vadd.f32 %v2374_v17, %v2254_v40  ;;  %v2579_v12 = vpop.f32.mrb[1].mxu1 }
 0x503   :  { %2378 = vadd.xlane.f32.xlu1 %v2375_v60 }
 0x590   :  { %v2379_v37 = vpop.xlane.xlu1 %2378 }
 0x591   :  { %v2381_v33 = vmul.f32 0.0078125, %v2379_v37 }
 0x593   :  { %v2382_v34 = vsub.f32 %v2375_v60, %v2381_v33 }
 0x595   :  { %v2383_v35 = vmul.f32 %v2382_v34, %v2382_v34 }
 0x597   :  { %2384 = vadd.xlane.f32.xlu0 %v2383_v35 }
 0x624   :  { %v2385_v1 = vpop.xlane.xlu0 %2384 }
 0x625   :  { %v2386_v22 = vmul.f32 0.0078125, %v2385_v1 }
 0x627   :  { %v2388_v30 = vadd.f32 1e-05, %v2386_v22 }
 0x629   :  { %2962 = vrsqrt.f32 %v2388_v30 }
 0x633   :  { %v2963_v25 = vpop.eup %2962 }
 0x634   :  { %v2390_v42 = vmul.f32 %v2963_v25, %v2387_v39 }
 0x636   :  { %2396 = vperm.xlu1 %2959, %v2390_v42   ;;  %v2392_v51 = vmul.f32 %v2390_v42, %v2381_v33 }
 0x638   :  { %v2393_v43 = vsub.f32 %v2391_v48, %v2392_v51 }
 0x63a   :  { %2402 = vperm.xlu0 %2958, %v2393_v43  }
 0x6b5   :  { %v2397_v44 = vpop.permute.xlu1 %2396 }
 0x6b6   :  { %v2399_v14 = vmul.f32 %v2397_v44, %v2375_v60 }
 0x6b9   :  { %v2403_v49 = vpop.permute.xlu0 %2402 }
 0x6ba   :  { %v2405_v50 = vadd.f32 %v2403_v49, %v2399_v14 }
 0x6bc   :  { %v2406_v52 = vmax.f32 %v2405_v50, 0.0 }
 0x6be   :  { %2407 = vst [vmem:[#allocation4] sm:$0xff] %v2406_v52 }
 0x6bf   :  { %2975 = shalt.err (!%p2972_p4)
}
 0x6c0   :  { %s2976_s22 = scalar_lea.hbm %s4353_s9, 128 }
 0x6c1   :  { %p2977_p5 = scmp.ne.s32.totalorder %s4353_s9, %s2976_s22  ;;  %p2980_p6 = scmp.lt.u32.totalorder %s2976_s22, %s4353_s9 }
 0x6c3   :  { %p2982_p7 = pnand %p2980_p6, %p2977_p5 }
 0x6c5   :  { %2985 = shalt.err (!%p2982_p7)
}
 0x6c6   :  { %2417 = dma.vmem_to_hbm [thread:$0]  %s2415_s20, 128, %s4353_s9, [#allocation5]  }
 0x6c7   :  { %2986 = dma.done.wait [#allocation5], 128  }
 0x6c8   :  { %2987 = vsyncadd [#allocation5], 4294967168 }
 0x6c9   :  { %2421 = vsyncpa [#allocation5], 1 }

</bundles_post_ra>
